<compile_context>
chip_gen: v5e
topology: v5e:2x2
jax: 0.10.0
libtpu: 0.0.40
codegen_flags: <defaults>
</compile_context>

<pallas_src>
import jax
import jax.numpy as jnp
from jax import lax
from jax.experimental import pallas as pl
from jax.experimental.pallas import tpu as pltpu


def _att_kernel(x_ref, wq_ref, wk_ref, wv_ref, bv_ref, pos_ref, out_ref):
    bt, L, C = x_ref.shape
    Ck = wq_ref.shape[1]

    x2 = x_ref[...].reshape(bt * L, C)                               # (Bt*L, C) bf16

    # Q / K / V projections (nn.Linear). bf16 operands, f32 accumulation on the MXU.
    # bq is omitted: for softmax over dim=1 it only shifts each key column by a
    # constant, which cancels exactly.
    q = jnp.dot(x2, wq_ref[...],
                preferred_element_type=jnp.float32).reshape(bt, L, Ck)
    k = jnp.dot(x2, wk_ref[...],
                preferred_element_type=jnp.float32).reshape(bt, L, Ck)
    v = (jnp.dot(x2, wv_ref[...],
                 preferred_element_type=jnp.float32) + bv_ref[...]).reshape(bt, L, C)

    # content = Q @ K^T + Q @ pos == Q @ (K + pos^T)^T  -- one batched MXU matmul.
    # pos_ref already holds pos^T + bk (folded in by the wrapper).
    k_aug = (k + pos_ref[...]).astype(jnp.bfloat16)                  # (Bt, L, Ck)
    scores = jnp.einsum('blk,bmk->blm', q.astype(jnp.bfloat16), k_aug,
                        preferred_element_type=jnp.float32)          # (Bt, L, L)

    # torch softmax(dim=1): normalize over the query axis (axis 1 of (Bt, L, L)).
    m = jnp.max(scores, axis=1, keepdims=True)                       # (Bt, 1, L)
    e = jnp.exp(scores - m)                                          # f32 exp (v5e-safe)
    s = jnp.sum(e, axis=1, keepdims=True)                            # (Bt, 1, L)
    inv = pl.reciprocal(s, approx=True)                              # EUP, nearly free
    p = (e * inv).astype(jnp.bfloat16)                               # (Bt, L, L)

    # Context aggregation; one contiguous (Bt, L, C) store.
    out_ref[...] = jnp.einsum('blm,bmc->blc', p, v.astype(jnp.bfloat16),
                              preferred_element_type=jnp.float32)


def att_forward(x, wq, bq, wk, bk, wv, bv, rel_h, rel_w, *, block_b=4):
    """x: (B, L, C).  wq/wk: (C, Ck), wv: (C, C) (torch weights pre-transposed).
    rel_h: (1, Ck, H, 1), rel_w: (1, Ck, 1, W) with H*W == L.  Returns (B, L, C) f32."""
    B, L, C = x.shape
    Ck = wq.shape[1]
    del bq  # provably dead under softmax(dim=1); see kernel comment.

    # Batch tile: amortize per-step overhead while keeping multiple grid steps
    # (>= 2 per TensorCore on v7x when B allows).
    bt = max(1, min(block_b, B))
    while B % bt:
        bt -= 1

    # position = (rel_h + rel_w).view(1, Ck, L); pass it transposed (L, Ck) with bk
    # folded in, so the kernel fuses it into K with no in-kernel transpose.
    pos_t = (jnp.transpose((rel_h + rel_w).reshape(Ck, L))
             + bk.reshape(1, Ck)).astype(jnp.float32)                # (L, Ck)
    bv2 = bv.reshape(1, C).astype(jnp.float32)

    # bf16 matmul operands (accumulation stays f32 in-kernel).
    x_bf = x.astype(jnp.bfloat16)
    wq_bf = wq.astype(jnp.bfloat16)
    wk_bf = wk.astype(jnp.bfloat16)
    wv_bf = wv.astype(jnp.bfloat16)

    return pl.pallas_call(
        _att_kernel,
        out_shape=jax.ShapeDtypeStruct((B, L, C), jnp.float32),
        grid_spec=pltpu.PrefetchScalarGridSpec(
            num_scalar_prefetch=0,
            grid=(B // bt,),
            in_specs=[
                pl.BlockSpec((bt, L, C), lambda b: (b, 0, 0)),   # x (batched tile)
                pl.BlockSpec((C, Ck), lambda b: (0, 0)),         # Wq
                pl.BlockSpec((C, Ck), lambda b: (0, 0)),         # Wk
                pl.BlockSpec((C, C), lambda b: (0, 0)),          # Wv
                pl.BlockSpec((1, C), lambda b: (0, 0)),          # bv
                pl.BlockSpec((L, Ck), lambda b: (0, 0)),         # pos^T + bk
            ],
            out_specs=pl.BlockSpec((bt, L, C), lambda b: (b, 0, 0)),
        ),
        compiler_params=pltpu.CompilerParams(
            dimension_semantics=("parallel",),      # batch-tile axis has no carry
            vmem_limit_bytes=32 * 1024 * 1024,      # re-derive tiles/limit for v7x 64 MiB
        ),
    )(x_bf, wq_bf, wk_bf, wv_bf, bv2, pos_t)
    # TODO(synk): at production L, add a lane-aligned key-axis grid tile ("arbitrary");
    # softmax over dim=1 spans the full query axis, so a two-pass or online-rescale
    # scheme over query tiles is required before the monolithic (L, L) tile OOMs.


def _reference(x, wq, bq, wk, bk, wv, bv, rel_h, rel_w):
    """Pure-JAX reference of Att.forward (torch semantics, softmax over dim=1)."""
    B, L, C = x.shape
    Ck = wq.shape[1]
    hp = lax.Precision.HIGHEST
    q = jnp.einsum('blc,ck->blk', x, wq, precision=hp) + bq
    k = jnp.einsum('blc,ck->blk', x, wk, precision=hp) + bk
    v = jnp.einsum('blc,cd->bld', x, wv, precision=hp) + bv
    pos = (rel_h + rel_w).reshape(Ck, L)
    content = (jnp.einsum('blk,bmk->blm', q, k, precision=hp)
               + jnp.einsum('blk,km->blm', q, pos, precision=hp))
    content = jax.nn.softmax(content, axis=1)
    return jnp.einsum('blm,bmc->blc', content, v, precision=hp)


if __name__ == "__main__":
    B, C, ratio = 16, 32, 8
    H = W = 8
    L = H * W
    Ck = C // ratio

    key = jax.random.PRNGKey(0)
    ks = jax.random.split(key, 9)
    x = jax.random.normal(ks[0], (B, L, C), jnp.float32)

    # Parameter shapes from __init__ (torch nn.Linear weight is (out, in); we pass its
    # transpose so the kernel does plain row-major matmuls).
    rel_h = jax.random.normal(ks[1], (1, Ck, H, 1), jnp.float32)
    rel_w = jax.random.normal(ks[2], (1, Ck, 1, W), jnp.float32)
    wq = (jax.random.normal(ks[3], (Ck, C), jnp.float32) * 0.05).T
    bq = jax.random.normal(ks[4], (Ck,), jnp.float32) * 0.05
    wk = (jax.random.normal(ks[5], (Ck, C), jnp.float32) * 0.05).T
    bk = jax.random.normal(ks[6], (Ck,), jnp.float32) * 0.05
    wv = (jax.random.normal(ks[7], (C, C), jnp.float32) * 0.05).T
    bv = jax.random.normal(ks[8], (C,), jnp.float32) * 0.05

    y = att_forward(x, wq, bq, wk, bk, wv, bv, rel_h, rel_w)
    jax.block_until_ready(y)

    assert y.shape == (B, L, C), y.shape
    y_ref = _reference(x, wq, bq, wk, bk, wv, bv, rel_h, rel_w)
    max_err = float(jnp.max(jnp.abs(y - y_ref)))
    # Tolerance loosened vs the f32 version: bf16 MXU operands + approx reciprocal.
    assert jnp.allclose(y, y_ref, atol=3e-2, rtol=3e-2), f"mismatch vs reference: {max_err}"

    print("KERNEL_OK")
</pallas_src>

<mosaic_0001>
module attributes {stable_mosaic.version = 11 : i64} {
  func.func @_att_kernel(%arg0: i32, %arg1: memref<4x64x32xbf16, #tpu.memory_space<vmem>>, %arg2: memref<32x4xbf16, #tpu.memory_space<vmem>>, %arg3: memref<32x4xbf16, #tpu.memory_space<vmem>>, %arg4: memref<32x32xbf16, #tpu.memory_space<vmem>>, %arg5: memref<1x32xf32, #tpu.memory_space<vmem>>, %arg6: memref<64x4xf32, #tpu.memory_space<vmem>>, %arg7: memref<4x64x32xf32, #tpu.memory_space<vmem>>) attributes {dimension_semantics = [#tpu.dimension_semantics<parallel>], iteration_bounds = array<i64: 4>, scalar_prefetch = 0 : i64, scratch_operands = 0 : i64, tpu.core_type = #tpu.core_type<tc>, window_params = [{transform_indices = @transform_0, window_bounds = array<i64: 4, 64, 32>}, {pipeline_mode = #tpu.pipeline_mode<synchronous>, transform_indices = @transform_1, window_bounds = array<i64: 32, 4>}, {pipeline_mode = #tpu.pipeline_mode<synchronous>, transform_indices = @transform_2, window_bounds = array<i64: 32, 4>}, {pipeline_mode = #tpu.pipeline_mode<synchronous>, transform_indices = @transform_3, window_bounds = array<i64: 32, 32>}, {pipeline_mode = #tpu.pipeline_mode<synchronous>, transform_indices = @transform_4, window_bounds = array<i64: 1, 32>}, {pipeline_mode = #tpu.pipeline_mode<synchronous>, transform_indices = @transform_5, window_bounds = array<i64: 64, 4>}, {transform_indices = @transform_6, window_bounds = array<i64: 4, 64, 32>}]} {
    %c0 = arith.constant 0 : index
    %c0_0 = arith.constant 0 : index
    %c0_1 = arith.constant 0 : index
    %0 = vector.load %arg1[%c0, %c0_0, %c0_1] : memref<4x64x32xbf16, #tpu.memory_space<vmem>>, vector<4x64x32xbf16>
    %1 = vector.shape_cast %0 : vector<4x64x32xbf16> to vector<256x32xbf16>
    %c0_2 = arith.constant 0 : index
    %c0_3 = arith.constant 0 : index
    %2 = vector.load %arg2[%c0_2, %c0_3] : memref<32x4xbf16, #tpu.memory_space<vmem>>, vector<32x4xbf16>
    %cst = arith.constant dense<0.000000e+00> : vector<256x4xf32>
    %3 = tpu.matmul %1, %2, %cst {dimension_numbers = #tpu.dot_dimension_numbers<[1], [0], [0], [1], [0, 0, 1, 1], [], []>} : vector<256x32xbf16>, vector<32x4xbf16>, vector<256x4xf32> -> vector<256x4xf32>
    %4 = vector.shape_cast %3 : vector<256x4xf32> to vector<4x64x4xf32>
    %c0_4 = arith.constant 0 : index
    %c0_5 = arith.constant 0 : index
    %5 = vector.load %arg3[%c0_4, %c0_5] : memref<32x4xbf16, #tpu.memory_space<vmem>>, vector<32x4xbf16>
    %cst_6 = arith.constant dense<0.000000e+00> : vector<256x4xf32>
    %6 = tpu.matmul %1, %5, %cst_6 {dimension_numbers = #tpu.dot_dimension_numbers<[1], [0], [0], [1], [0, 0, 1, 1], [], []>} : vector<256x32xbf16>, vector<32x4xbf16>, vector<256x4xf32> -> vector<256x4xf32>
    %7 = vector.shape_cast %6 : vector<256x4xf32> to vector<4x64x4xf32>
    %c0_7 = arith.constant 0 : index
    %c0_8 = arith.constant 0 : index
    %8 = vector.load %arg4[%c0_7, %c0_8] : memref<32x32xbf16, #tpu.memory_space<vmem>>, vector<32x32xbf16>
    %cst_9 = arith.constant dense<0.000000e+00> : vector<256x32xf32>
    %9 = tpu.matmul %1, %8, %cst_9 {dimension_numbers = #tpu.dot_dimension_numbers<[1], [0], [0], [1], [0, 0, 1, 1], [], []>} : vector<256x32xbf16>, vector<32x32xbf16>, vector<256x32xf32> -> vector<256x32xf32>
    %c0_10 = arith.constant 0 : index
    %c0_11 = arith.constant 0 : index
    %10 = vector.load %arg5[%c0_10, %c0_11] : memref<1x32xf32, #tpu.memory_space<vmem>>, vector<1x32xf32>
    %11 = vector.broadcast %10 : vector<1x32xf32> to vector<256x32xf32>
    %12 = arith.addf %9, %11 : vector<256x32xf32>
    %13 = vector.shape_cast %12 : vector<256x32xf32> to vector<4x64x32xf32>
    %c0_12 = arith.constant 0 : index
    %c0_13 = arith.constant 0 : index
    %14 = vector.load %arg6[%c0_12, %c0_13] : memref<64x4xf32, #tpu.memory_space<vmem>>, vector<64x4xf32>
    %15 = vector.shape_cast %14 : vector<64x4xf32> to vector<1x64x4xf32>
    %16 = vector.broadcast %15 : vector<1x64x4xf32> to vector<4x64x4xf32>
    %17 = arith.addf %7, %16 : vector<4x64x4xf32>
    %18 = arith.truncf %17 : vector<4x64x4xf32> to vector<4x64x4xbf16>
    %19 = arith.truncf %4 : vector<4x64x4xf32> to vector<4x64x4xbf16>
    "tpu.trace_start"() <{level = 10 : i32, message = "blk,bmk->blm"}> : () -> ()
    %cst_14 = arith.constant dense<0.000000e+00> : vector<4x64x64xf32>
    %20 = tpu.matmul %19, %18, %cst_14 {dimension_numbers = #tpu.dot_dimension_numbers<[2], [2], [1], [1], [0, 0, 0, 1, 1, 1], [0], [0]>} : vector<4x64x4xbf16>, vector<4x64x4xbf16>, vector<4x64x64xf32> -> vector<4x64x64xf32>
    "tpu.trace_stop"() : () -> ()
    %cst_15 = arith.constant dense<0xFF800000> : vector<4x64xf32>
    %21 = vector.multi_reduction <maximumf>, %20, %cst_15 [1] : vector<4x64x64xf32> to vector<4x64xf32>
    %22 = vector.shape_cast %21 : vector<4x64xf32> to vector<4x1x64xf32>
    %23 = vector.broadcast %22 : vector<4x1x64xf32> to vector<4x64x64xf32>
    %24 = arith.subf %20, %23 : vector<4x64x64xf32>
    %25 = math.exp %24 : vector<4x64x64xf32>
    %cst_16 = arith.constant dense<0.000000e+00> : vector<4x64xf32>
    %26 = vector.multi_reduction <add>, %25, %cst_16 [1] : vector<4x64x64xf32> to vector<4x64xf32>
    %27 = vector.shape_cast %26 : vector<4x64xf32> to vector<4x1x64xf32>
    %28 = tpu.reciprocal %27 {approx = true} : vector<4x1x64xf32> -> vector<4x1x64xf32>
    %29 = vector.broadcast %28 : vector<4x1x64xf32> to vector<4x64x64xf32>
    %30 = arith.mulf %25, %29 : vector<4x64x64xf32>
    %31 = arith.truncf %30 : vector<4x64x64xf32> to vector<4x64x64xbf16>
    %32 = arith.truncf %13 : vector<4x64x32xf32> to vector<4x64x32xbf16>
    "tpu.trace_start"() <{level = 10 : i32, message = "blm,bmc->blc"}> : () -> ()
    %cst_17 = arith.constant dense<0.000000e+00> : vector<4x64x32xf32>
    %33 = tpu.matmul %31, %32, %cst_17 {dimension_numbers = #tpu.dot_dimension_numbers<[2], [1], [1], [2], [0, 0, 0, 1, 1, 2], [0], [0]>} : vector<4x64x64xbf16>, vector<4x64x32xbf16>, vector<4x64x32xf32> -> vector<4x64x32xf32>
    "tpu.trace_stop"() : () -> ()
    %c0_18 = arith.constant 0 : index
    %c0_19 = arith.constant 0 : index
    %c0_20 = arith.constant 0 : index
    %34 = vector.load %arg7[%c0_18, %c0_19, %c0_20] : memref<4x64x32xf32, #tpu.memory_space<vmem>>, vector<4x64x32xf32>
    tpu.vector_store %arg7[%c0_18, %c0_19, %c0_20], %33 {strides = array<i32>} : memref<4x64x32xf32, #tpu.memory_space<vmem>>, vector<4x64x32xf32>,
    return
  }
  func.func @transform_0(%arg0: i32) -> (i32, i32, i32) {
    %c0_i32 = arith.constant 0 : i32
    %c0_i32_0 = arith.constant 0 : i32
    %c0_i32_1 = arith.constant 0 : i32
    return %arg0, %c0_i32, %c0_i32_0 : i32, i32, i32
  }
  func.func @transform_1(%arg0: i32) -> (i32, i32) {
    %c0_i32 = arith.constant 0 : i32
    %c0_i32_0 = arith.constant 0 : i32
    %c0_i32_1 = arith.constant 0 : i32
    return %c0_i32, %c0_i32_0 : i32, i32
  }
  func.func @transform_2(%arg0: i32) -> (i32, i32) {
    %c0_i32 = arith.constant 0 : i32
    %c0_i32_0 = arith.constant 0 : i32
    %c0_i32_1 = arith.constant 0 : i32
    return %c0_i32, %c0_i32_0 : i32, i32
  }
  func.func @transform_3(%arg0: i32) -> (i32, i32) {
    %c0_i32 = arith.constant 0 : i32
    %c0_i32_0 = arith.constant 0 : i32
    %c0_i32_1 = arith.constant 0 : i32
    return %c0_i32, %c0_i32_0 : i32, i32
  }
  func.func @transform_4(%arg0: i32) -> (i32, i32) {
    %c0_i32 = arith.constant 0 : i32
    %c0_i32_0 = arith.constant 0 : i32
    %c0_i32_1 = arith.constant 0 : i32
    return %c0_i32, %c0_i32_0 : i32, i32
  }
  func.func @transform_5(%arg0: i32) -> (i32, i32) {
    %c0_i32 = arith.constant 0 : i32
    %c0_i32_0 = arith.constant 0 : i32
    %c0_i32_1 = arith.constant 0 : i32
    return %c0_i32, %c0_i32_0 : i32, i32
  }
  func.func @transform_6(%arg0: i32) -> (i32, i32, i32) {
    %c0_i32 = arith.constant 0 : i32
    %c0_i32_0 = arith.constant 0 : i32
    %c0_i32_1 = arith.constant 0 : i32
    return %arg0, %c0_i32, %c0_i32_0 : i32, i32, i32
  }
}

</mosaic_0001>

<bundles_post_ra>
// kernel: tpu_custom_call.1
= control target key start
LH: loop header
LB: loop body
LE: loop exit
PB: predicated region body
PF: predicated region fallthrough
CT: control target
= control target key end

     0   :  { %s2347_s21 = smov 0   ;;  %s3190_s0 = inlined_call_operand.vmem [shape: bf16[16,64,32], index: 0, kind: input, shape index: {}]   ;;  %s3191_s1 = inlined_call_operand.vmem [shape: bf16[32,4], index: 1, kind: input, shape index: {}]   ;;  %s3192_s2 = inlined_call_operand.vmem [shape: bf16[32,4], index: 2, kind: input, shape index: {}]   ;;  %s3193_s3 = inlined_call_operand.vmem [shape: bf16[32,32], index: 3, kind: input, shape index: {}]   ;;  %s3194_s4 = inlined_call_operand.vmem [shape: f32[1,32], index: 4, kind: input, shape index: {}]   ;;  %s3195_s5 = inlined_call_operand.vmem [shape: f32[64,4], index: 5, kind: input, shape index: {}]   ;;  %s3196_s6 = inlined_call_operand.vmem [shape: f32[16,64,32], index: 6, kind: output, shape index: {}]  }
   0x1 LB: > { %s2013_s22 = sadd.s32 4294967295, %s2310_s21   ;;  %p2017_p0 = scmp.ge.s32.totalorder %s2310_s21, 1  ;;  %s2310_s21 = sphi %s2347_s21, %s16_s21  }
   0x2   : > { %p214_p1 = scmp.lt.s32.totalorder %s2310_s21, 5 }
   0x4   : > { %p215_p2 = pnand %p2017_p0, %p214_p1 }
   0x5   : > { %s2018_s27 = sshll.u32 (!%p215_p2), %s2013_s22, 2 }
   0x6   : > { %218 = sbr.rel (%p215_p2) target bundleno = 880 (0x370), region = 44  ;;  %p247_p3 = scmp.lt.s32.totalorder (!%p215_p2), %s2018_s27, 15 }
   0xb   : > { %v2213_v0 = vld [vmem:[%s3191_s1 + $0x8] sm:$0xff]  ;;  %v2212_v2 = vld [vmem:[%s3191_s1] sm:$0xff]  ;;  %s3198_s27 = smov (!%p247_p3, %s2018_s27), 15  ;;  %vm389_vm0 = vcmask 261120   ;;  %v2466_v49 = vld [vmem:[%s3195_s5 + $0x30] sm:$0xff]  ;;  %vm885_vm1 = vcmask 31744  }
   0xc   : > { %v2215_v1 = vld [vmem:[%s3192_s2 + $0x8] sm:$0xff]  ;;  %444 = vmatpush.bf16.msra.mxu0 %v2213_v0  ;;  %v2214_v3 = vld [vmem:[%s3192_s2] sm:$0xff]  ;;  %s2194_s8 = sshll.u32 %s3198_s27, 5  ;;  %v2481_v52 = vld [vmem:[%s3195_s5 + $0x38] sm:$0xff]  ;;  %vm1218_vm2 = vcmask 523264   ;;  %s2195_s14 = sshll.u32 %s3198_s27, 6 }
   0xd   : > { %549 = vmatpush.bf16.msra.mxu1 %v2215_v1  ;;  %s2373_s11 = scalar_lea.vmem %s3190_s0, %s2194_s8  ;;  %v2217_v6 = vld [vmem:[%s3193_s3 + $0x8] sm:$0xff]  ;;  %v2216_v7 = vld [vmem:[%s3193_s3] sm:$0xff]  ;;  %s3067_s17 = scalar_lea.vmem %s3196_s6, %s2195_s14 }
   0xe   : > { %v2196_v4 = vld [vmem:[%s2373_s11] sm:$0xff]  ;;  %v2197_v5 = vld [vmem:[%s2373_s11 + $0x8] sm:$0xff]  ;;  %658 = vmatpush.bf16.msra.mxu2 %v2217_v6  ;;  %v2198_v8 = vld [vmem:[%s2373_s11 + $0x10] sm:$0xff] }
   0xf   : > { %v2199_v9 = vld [vmem:[%s2373_s11 + $0x18] sm:$0xff]  ;;  %v2200_v10 = vld [vmem:[%s2373_s11 + $0x20] sm:$0xff]  ;;  %v2201_v11 = vld [vmem:[%s2373_s11 + $0x28] sm:$0xff] }
  0x10   : > { %445 = vmatpush.bf16.msra.mxu0 %v2212_v2  ;;  %v2202_v12 = vld [vmem:[%s2373_s11 + $0x30] sm:$0xff]  ;;  %v2203_v13 = vld [vmem:[%s2373_s11 + $0x38] sm:$0xff]  ;;  %v2204_v14 = vld [vmem:[%s2373_s11 + $0x40] sm:$0xff] }
  0x11   : > { %550 = vmatpush.bf16.msra.mxu1 %v2214_v3  ;;  %v2416_v17 = vld [vmem:[%s3195_s5] sm:$0xff]  ;;  %v2424_v20 = vld [vmem:[%s3195_s5 + $0x8] sm:$0xff]  ;;  %v2206_v38 = vld [vmem:[%s2373_s11 + $0x50] sm:$0xff] }
  0x12   : > { %659 = vmatpush.bf16.msra.mxu2 %v2216_v7  ;;  %v2205_v32 = vld [vmem:[%s2373_s11 + $0x48] sm:$0xff]  ;;  %v2457_v45 = vld [vmem:[%s2373_s11 + $0x58] sm:$0xff]  ;;  %v2488_v56 = vld [vmem:[%s3195_s5 + $0x20] sm:$0xff] }
  0x13   : > { %2096 = vmatmul.msk.bf16.vlgmr.msra.gmra.mxu0 %vm389_vm0, %v2196_v4  ;;  %v2476_v51 = vld [vmem:[%s3195_s5 + $0x28] sm:$0xff] }
  0x14   : > { %2120 = vmatmul.msk.bf16.vlgmr.msra.gmra.mxu1 %vm389_vm0, %v2196_v4 }
  0x15   : > { %2144 = vmatmul.msk.bf16.vlgmr.msra.gmra.mxu2 %vm389_vm0, %v2196_v4 }
  0x23   : > { %2097 = vmatmul.msk.bf16.gmra.mxu0 %vm389_vm0, %v2197_v5 }
  0x24   : > { %2121 = vmatmul.msk.bf16.gmra.mxu1 %vm389_vm0, %v2197_v5 }
  0x25   : > { %2145 = vmatmul.msk.bf16.gmra.mxu2 %vm389_vm0, %v2197_v5  ;;  %v2503_v5 = vld [vmem:[%s3195_s5 + $0x18] sm:$0xff] }
  0x33   : > { %2098 = vmatmul.msk.bf16.gmra.mxu0 %vm389_vm0, %v2198_v8 }
  0x34   : > { %2122 = vmatmul.msk.bf16.gmra.mxu1 %vm389_vm0, %v2198_v8 }
  0x35   : > { %2146 = vmatmul.msk.bf16.gmra.mxu2 %vm389_vm0, %v2198_v8  ;;  %v2506_v8 = vld [vmem:[%s2373_s11 + $0x60] sm:$0xff] }
  0x43   : > { %2099 = vmatmul.msk.bf16.gmra.mxu0 %vm389_vm0, %v2199_v9 }
  0x44   : > { %2123 = vmatmul.msk.bf16.gmra.mxu1 %vm389_vm0, %v2199_v9 }
  0x45   : > { %2147 = vmatmul.msk.bf16.gmra.mxu2 %vm389_vm0, %v2199_v9 }
  0x53   : > { %2100 = vmatmul.msk.bf16.gmra.mxu0 %vm389_vm0, %v2200_v10 }
  0x54   : > { %2124 = vmatmul.msk.bf16.gmra.mxu1 %vm389_vm0, %v2200_v10 }
  0x55   : > { %2148 = vmatmul.msk.bf16.gmra.mxu2 %vm389_vm0, %v2200_v10 }
  0x63   : > { %2101 = vmatmul.msk.bf16.gmra.mxu0 %vm389_vm0, %v2201_v11 }
  0x64   : > { %2125 = vmatmul.msk.bf16.gmra.mxu1 %vm389_vm0, %v2201_v11 }
  0x65   : > { %2149 = vmatmul.msk.bf16.gmra.mxu2 %vm389_vm0, %v2201_v11  ;;  %v2513_v11 = vld [vmem:[%s3195_s5 + $0x10] sm:$0xff] }
  0x73   : > { %2102 = vmatmul.msk.bf16.gmra.mxu0 %vm389_vm0, %v2202_v12 }
  0x74   : > { %2126 = vmatmul.msk.bf16.gmra.mxu1 %vm389_vm0, %v2202_v12 }
  0x75   : > { %2150 = vmatmul.msk.bf16.gmra.mxu2 %vm389_vm0, %v2202_v12 }
  0x83   : > { %2103 = vmatmul.msk.bf16.gmra.mxu0 %vm389_vm0, %v2203_v13 }
  0x84   : > { %2127 = vmatmul.msk.bf16.gmra.mxu1 %vm389_vm0, %v2203_v13 }
  0x85   : > { %2151 = vmatmul.msk.bf16.gmra.mxu2 %vm389_vm0, %v2203_v13 }
  0x90   : > { %v447_v15 = vpop.f32.mrf.mxu0 }
  0x91   : > { %v552_v16 = vpop.f32.mrf.mxu1  ;;  %v813_v18 = vpack.c.bf16 %v447_v15, %v447_v15 }
  0x92   : > { %v749_v19 = vadd.f32 %v2416_v17, %v552_v16 }
  0x93   : > { %2104 = vmatmul.msk.bf16.gmra.mxu0 %vm389_vm0, %v2204_v14  ;;  %v2426_v23 = vunpack.c.l.b16 %v813_v18 }
  0x94   : > { %2128 = vmatmul.msk.bf16.gmra.mxu1 %vm389_vm0, %v2204_v14  ;;  %v781_v24 = vpack.c.bf16 %v749_v19, %v749_v19 }
  0x95   : > { %2152 = vmatmul.msk.bf16.gmra.mxu2 %vm389_vm0, %v2204_v14 }
  0x96   : > { %v2432_v29 = vunpack.c.l.b16 %v781_v24 }
  0x98   : > { %v449_v21 = vpop.f32.mrf.mxu0  ;;  %v2445_v39 = vpop.f32.mrf.mxu2 }
  0x99   : > { %v554_v22 = vpop.f32.mrf.mxu1  ;;  %v814_v25 = vpack.c.bf16 %v449_v21, %v449_v21 }
  0x9a   : > { %v750_v26 = vadd.f32 %v2424_v20, %v554_v22 }
  0x9b   : > { %v2429_v27 = vunpack.c.l.b16 %v814_v25 }
  0x9c   : > { %v782_v28 = vpack.c.bf16 %v750_v26, %v750_v26 }
  0x9d   : > { %v861_v30 = vpack.c.b16 %v2429_v27, %v2426_v23 }
  0x9e   : > { %v2436_v31 = vunpack.c.l.b16 %v782_v28 }
  0xa0   : > { %v881_v33 = vpack.c.b16 %v2436_v31, %v2432_v29  ;;  %v452_v34 = vpop.f32.mrf.mxu0  ;;  %v2451_v42 = vpop.f32.mrf.mxu2 }
  0xa1   : > { %v557_v35 = vpop.f32.mrf.mxu1  ;;  %v815_v53 = vpack.c.bf16 %v452_v34, %v452_v34 }
  0xa2   : > { %v751_v18 = vadd.f32 %v2513_v11, %v557_v35 }
  0xa3   : > { %2105 = vmatmul.msk.bf16.gmra.mxu0 %vm389_vm0, %v2205_v32  ;;  %v2494_v62 = vunpack.c.l.b16 %v815_v53 }
  0xa4   : > { %2129 = vmatmul.msk.bf16.gmra.mxu1 %vm389_vm0, %v2205_v32  ;;  %v783_v25 = vpack.c.bf16 %v751_v18, %v751_v18 }
  0xa5   : > { %2153 = vmatmul.msk.bf16.gmra.mxu2 %vm389_vm0, %v2205_v32 }
  0xa8   : > { %v454_v36 = vpop.f32.mrf.mxu0  ;;  %v2459_v46 = vpop.f32.mrf.mxu2 }
  0xa9   : > { %v559_v37 = vpop.f32.mrf.mxu1  ;;  %v816_v54 = vpack.c.bf16 %v454_v36, %v454_v36 }
  0xaa   : > { %v752_v14 = vadd.f32 %v2503_v5, %v559_v37 }
  0xab   : > { %v2496_v63 = vunpack.c.l.b16 %v816_v54  ;;  %v2546_v54 = vld [vmem:[%s3194_s4] ss:$0 sm:$0xff] }
  0xac   : > { %v784_v21 = vpack.c.bf16 %v752_v14, %v752_v14 }
  0xad   : > { %v862_v10 = vpack.c.b16 %v2496_v63, %v2494_v62 }
  0xae   : > { %v876_v36 = vunpack.c.l.b16 %v784_v21 }
  0xb0   : > { %v2447_v40 = vpop.f32.mrf.mxu0  ;;  %v2483_v55 = vpop.f32.mrf.mxu2 }
  0xb1   : > { %v562_v41 = vpop.f32.mrf.mxu1  ;;  %v817_v26 = vpack.c.bf16 %v2447_v40, %v2447_v40  ;;  %v669_v29 = vadd.f32 %v2546_v54, %v2483_v55 }
  0xb2   : > { %v753_v0 = vadd.f32 %v2488_v56, %v562_v41 }
  0xb3   : > { %2106 = vmatmul.msk.bf16.gmra.mxu0 %vm389_vm0, %v2206_v38 }
  0xb4   : > { %2130 = vmatmul.msk.bf16.gmra.mxu1 %vm389_vm0, %v2206_v38  ;;  %v785_v6 = vpack.c.bf16 %v753_v0, %v753_v0 }
  0xb5   : > { %2154 = vmatmul.msk.bf16.gmra.mxu2 %vm389_vm0, %v2206_v38 }
  0xb6   : > { %v877_v19 = vunpack.c.l.b16 %v785_v6 }
  0xb8   : > { %v2453_v43 = vpop.f32.mrf.mxu0  ;;  %v671_v9 = vpop.f32.mrf.mxu2 }
  0xb9   : > { %v564_v44 = vpop.f32.mrf.mxu1  ;;  %v818_v28 = vpack.c.bf16 %v2453_v43, %v2453_v43 }
  0xba   : > { %v754_v59 = vadd.f32 %v2476_v51, %v564_v44  ;;  %v875_v44 = vunpack.c.l.b16 %v783_v25 }
  0xbb   : > { %v2535_v40 = vunpack.c.l.b16 %v818_v28  ;;  %v2210_v28 = vld [vmem:[%s2373_s11 + $0x70] sm:$0xff] }
  0xbc   : > { %v786_v2 = vpack.c.bf16 %v754_v59, %v754_v59  ;;  %v882_v53 = vpack.c.b16 %v876_v36, %v875_v44 }
  0xbe   : > { %v878_v15 = vunpack.c.l.b16 %v786_v2 }
  0xc0   : > { %v2461_v47 = vpop.f32.mrf.mxu0  ;;  %v883_v24 = vpack.c.b16 %v878_v15, %v877_v19  ;;  %v673_v32 = vpop.f32.mrf.mxu2  ;;  %v899_v15 = vsel %vm885_vm1, %v881_v33, 0 }
  0xc1   : > { %v567_v48 = vpop.f32.mrf.mxu1  ;;  %v674_v18 = vadd.f32 %v2546_v54, %v673_v32 }
  0xc2   : > { %v755_v50 = vadd.f32 %v2466_v49, %v567_v48  ;;  %v905_v41 = vsel %vm885_vm1, %v883_v24, 0  ;;  %v2533_v48 = vunpack.c.l.b16 %v817_v26  ;;  %v1554_v26 = vpack.c.bf16 %v669_v29, %v669_v29 }
  0xc3   : > { %2107 = vmatmul.msk.bf16.gmra.mxu0 %vm389_vm0, %v2457_v45 }
  0xc4   : > { %2131 = vmatmul.msk.bf16.gmra.mxu1 %vm389_vm0, %v2457_v45  ;;  %v787_v60 = vpack.c.bf16 %v755_v50, %v755_v50 }
  0xc5   : > { %2155 = vmatmul.msk.bf16.gmra.mxu2 %vm389_vm0, %v2457_v45  ;;  %v902_v45 = vsel %vm885_vm1, %v882_v53, 0  ;;  %v1614_v53 = vunpack.c.l.b16 %v1554_v26 }
  0xc6   : > { %v879_v3 = vunpack.c.l.b16 %v787_v60  ;;  %v863_v60 = vpack.c.b16 %v2535_v40, %v2533_v48 }
  0xc8   : > { %v2490_v57 = vpop.f32.mrf.mxu0  ;;  %v676_v59 = vpop.f32.mrf.mxu2 }
  0xc9   : > { %v569_v58 = vpop.f32.mrf.mxu1 }
  0xca   : > { %v756_v61 = vadd.f32 %v2481_v52, %v569_v58  ;;  %v2209_v58 = vld [vmem:[%s2373_s11 + $0x68] sm:$0xff] }
  0xcc   : > { %v788_v1 = vpack.c.bf16 %v756_v61, %v756_v61 }
  0xce   : > { %v880_v4 = vunpack.c.l.b16 %v788_v1  ;;  %v677_v1 = vadd.f32 %v2546_v54, %v676_v59 }
  0xd0   : > { %v884_v7 = vpack.c.b16 %v880_v4, %v879_v3  ;;  %v467_v12 = vpop.f32.mrf.mxu0  ;;  %v1557_v2 = vpack.c.bf16 %v677_v1, %v677_v1  ;;  %v819_v3 = vpack.c.bf16 %v2461_v47, %v2461_v47  ;;  %v820_v4 = vpack.c.bf16 %v2490_v57, %v2490_v57  ;;  %v678_v6 = vpop.f32.mrf.mxu2 }
  0xd1   : > { %v2515_v13 = vpop.f32.mrf.mxu1  ;;  %v821_v22 = vpack.c.bf16 %v467_v12, %v467_v12  ;;  %v679_v14 = vadd.f32 %v2546_v54, %v678_v6 }
  0xd2   : > { %v908_v16 = vsel %vm885_vm1, %v884_v7, 0  ;;  %v1617_v47 = vunpack.c.l.b16 %v1557_v2  ;;  %v2574_v19 = vunpack.c.l.b16 %v819_v3  ;;  %v2576_v21 = vunpack.c.l.b16 %v820_v4 }
  0xd3   : > { %914 = vmatpush.bf16.xpose.msrb.mxu0 %v908_v16  ;;  %2218 = vmatpush.bf16.xpose.msra.mxu3 %v908_v16  ;;  %v2530_v37 = vunpack.c.l.b16 %v821_v22  ;;  %v672_v16 = vadd.f32 %v2546_v54, %v671_v9  ;;  %v1558_v57 = vpack.c.bf16 %v679_v14, %v679_v14  ;;  %v667_v22 = vadd.f32 %v2546_v54, %v2459_v46 }
  0xd4   : > { %2108 = vmatmul.msk.bf16.gmra.mxu0 %vm389_vm0, %v2506_v8  ;;  %2132 = vmatmul.msk.bf16.gmra.mxu1 %vm389_vm0, %v2506_v8  ;;  %v1556_v9 = vpack.c.bf16 %v674_v18, %v674_v18  ;;  %v757_v27 = vadd.f32 %v2416_v17, %v2515_v13 }
  0xd5   : > { %v1618_v31 = vunpack.c.l.b16 %v1558_v57  ;;  %2156 = vmatmul.msk.bf16.gmra.mxu2 %vm389_vm0, %v2506_v8  ;;  %v1555_v33 = vpack.c.bf16 %v672_v16, %v672_v16  ;;  %v1553_v25 = vpack.c.bf16 %v667_v22, %v667_v22  ;;  %v662_v8 = vadd.f32 %v2546_v54, %v2445_v39 }
  0xd7   : > { %v1622_v24 = vpack.c.b16 %v1618_v31, %v1617_v47  ;;  %v1615_v55 = vunpack.c.l.b16 %v1555_v33  ;;  %v1613_v44 = vunpack.c.l.b16 %v1553_v25 }
  0xd8   : > { %v469_v34 = vpop.f32.mrf.mxu0  ;;  %v2585_v32 = vpop.f32.mrf.mxu2 }
  0xd9   : > { %v2528_v35 = vpop.f32.mrf.mxu1  ;;  %v822_v38 = vpack.c.bf16 %v469_v34, %v469_v34  ;;  %v864_v34 = vpack.c.b16 %v2576_v21, %v2574_v19  ;;  %v1620_v63 = vpack.c.b16 %v1614_v53, %v1613_v44 }
  0xdb   : > { %915 = vmatpush.bf16.xpose.msrb.mxu0 %v905_v41  ;;  %2219 = vmatpush.bf16.xpose.msra.mxu3 %v905_v41  ;;  %v2537_v50 = vunpack.c.l.b16 %v822_v38  ;;  %v1616_v38 = vunpack.c.l.b16 %v1556_v9  ;;  %v664_v41 = vadd.f32 %v2546_v54, %v2451_v42  ;;  %v2211_v42 = vld [vmem:[%s2373_s11 + $0x78] sm:$0xff] }
  0xdd   : > { %v955_v43 = vpack.c.b16 %v2537_v50, %v2530_v37  ;;  %v1621_v59 = vpack.c.b16 %v1616_v38, %v1615_v55  ;;  %v1552_v1 = vpack.c.bf16 %v664_v41, %v664_v41 }
  0xdf   : > { %v1612_v3 = vunpack.c.l.b16 %v1552_v1 }
  0xe0   : > { %v2551_v61 = vpop.f32.mrf.mxu0  ;;  %v2601_v62 = vpop.f32.mrf.mxu2 }
  0xe1   : > { %v2553_v0 = vpop.f32.mrf.mxu1 }
  0xe3   : > { %916 = vmatpush.bf16.xpose.msrb.mxu0 %v902_v45  ;;  %2220 = vmatpush.bf16.xpose.msra.mxu3 %v902_v45  ;;  %v1551_v45 = vpack.c.bf16 %v662_v8, %v662_v8 }
  0xe4   : > { %2109 = vmatmul.msk.bf16.gmra.mxu0 %vm389_vm0, %v2209_v58  ;;  %2133 = vmatmul.msk.bf16.gmra.mxu1 %vm389_vm0, %v2209_v58 }
  0xe5   : > { %v1611_v2 = vunpack.c.l.b16 %v1551_v45  ;;  %2157 = vmatmul.msk.bf16.gmra.mxu2 %vm389_vm0, %v2209_v58 }
  0xe7   : > { %v1619_v4 = vpack.c.b16 %v1612_v3, %v1611_v2 }
  0xe8   : > { %v2563_v7 = vpop.f32.mrf.mxu0  ;;  %v2607_v6 = vpop.f32.mrf.mxu2 }
  0xe9   : > { %v2565_v12 = vpop.f32.mrf.mxu1  ;;  %v824_v37 = vpack.c.bf16 %v2563_v7, %v2563_v7 }
  0xea   : > { %v760_v26 = vadd.f32 %v2503_v5, %v2565_v12 }
  0xeb   : > { %917 = vmatpush.bf16.xpose.msrb.mxu0 %v899_v15  ;;  %2221 = vmatpush.bf16.xpose.msra.mxu3 %v899_v15 }
  0xec   : > { %v792_v8 = vpack.c.bf16 %v760_v26, %v760_v26 }
  0xee   : > { %v970_v1 = vunpack.c.l.b16 %v792_v8 }
  0xf0   : > { %v2589_v36 = vpop.f32.mrf.mxu0  ;;  %v2618_v58 = vpop.f32.mrf.mxu2 }
  0xf1   : > { %v582_v46 = vpop.f32.mrf.mxu1 }
  0xf2   : > { %2161 = vmatmul.msk.bf16.vlgmr.msra.gmra.mxu3 %vm885_vm1, %v862_v10  ;;  %v761_v48 = vadd.f32 %v2488_v56, %v582_v46 }
  0xf3   : > { %1643 = vmatpush.bf16.msra.mxu0 %v1622_v24 }
  0xf4   : > { %2110 = vmatmul.msk.bf16.gmra.mxu0 %vm389_vm0, %v2210_v28  ;;  %2134 = vmatmul.msk.bf16.gmra.mxu1 %vm389_vm0, %v2210_v28  ;;  %v793_v31 = vpack.c.bf16 %v761_v48, %v761_v48 }
  0xf5   : > { %2158 = vmatmul.msk.bf16.gmra.mxu2 %vm389_vm0, %v2210_v28  ;;  %v759_v28 = vadd.f32 %v2513_v11, %v2553_v0 }
  0xf6   : > { %v971_v46 = vunpack.c.l.b16 %v793_v31 }
  0xf7   : > { %1644 = vmatpush.bf16.msra.mxu0 %v1621_v59  ;;  %v791_v12 = vpack.c.bf16 %v759_v28, %v759_v28  ;;  %v758_v59 = vadd.f32 %v2424_v20, %v2528_v35 }
  0xf8   : > { %v2603_v10 = vpop.f32.mrf.mxu0  ;;  %v691_v9 = vpop.f32.mrf.mxu2 }
  0xf9   : > { %v584_v39 = vpop.f32.mrf.mxu1  ;;  %v790_v2 = vpack.c.bf16 %v758_v59, %v758_v59  ;;  %v692_v28 = vadd.f32 %v2546_v54, %v691_v9 }
  0xfa   : > { %v762_v57 = vadd.f32 %v2476_v51, %v584_v39 }
  0xfb   : > { %1645 = vmatpush.bf16.msra.mxu0 %v1620_v63 }
  0xff   : > { %1646 = vmatpush.bf16.msra.mxu0 %v1619_v4 }
 0x100   : > { %v2609_v14 = vpop.f32.mrf.mxu0  ;;  %v693_v53 = vpop.f32.mrf.mxu2 }
 0x101   : > { %v587_v15 = vpop.f32.mrf.mxu1 }
 0x102   : > { %2162 = vmatmul.msk.bf16.gmra.mxu3 %vm885_vm1, %v863_v60  ;;  %v763_v16 = vadd.f32 %v2466_v49, %v587_v15  ;;  %v794_v60 = vpack.c.bf16 %v762_v57, %v762_v57  ;;  %v789_v15 = vpack.c.bf16 %v757_v27, %v757_v27  ;;  %v968_v57 = vunpack.c.l.b16 %v790_v2 }
 0x103   : > { %v682_v2 = vadd.f32 %v2546_v54, %v2585_v32 }
 0x104   : > { %2111 = vmatmul.msk.bf16.gmra.mxu0 %vm389_vm0, %v2211_v42  ;;  %2135 = vmatmul.msk.bf16.gmra.mxu1 %vm389_vm0, %v2211_v42  ;;  %v795_v19 = vpack.c.bf16 %v763_v16, %v763_v16  ;;  %v972_v55 = vunpack.c.l.b16 %v794_v60  ;;  %v967_v48 = vunpack.c.l.b16 %v789_v15 }
 0x105   : > { %2159 = vmatmul.msk.bf16.gmra.mxu2 %vm389_vm0, %v2211_v42  ;;  %v1559_v50 = vpack.c.bf16 %v682_v2, %v682_v2 }
 0x106   : > { %v973_v22 = vunpack.c.l.b16 %v795_v19  ;;  %v977_v44 = vpack.c.b16 %v972_v55, %v971_v46  ;;  %v694_v46 = vadd.f32 %v2546_v54, %v693_v53 }
 0x108   : > { %v2620_v18 = vpop.f32.mrf.mxu0  ;;  %v998_v23 = vsel %vm885_vm1, %v977_v44, 0  ;;  %v689_v44 = vadd.f32 %v2546_v54, %v2618_v58 }
 0x109   : > { %v589_v47 = vpop.f32.mrf.mxu1 }
 0x10a   : > { %v764_v21 = vadd.f32 %v2481_v52, %v589_v47  ;;  %v696_v47 = vpop.f32.mrf.mxu2 }
 0x10b   : > { %v697_v42 = vadd.f32 %v2546_v54, %v696_v47 }
 0x10c   : > { %v796_v40 = vpack.c.bf16 %v764_v21, %v764_v21 }
 0x10e   : > { %v974_v29 = vunpack.c.l.b16 %v796_v40  ;;  %v975_v40 = vpack.c.b16 %v968_v57, %v967_v48 }
 0x110   : > { %v978_v33 = vpack.c.b16 %v974_v29, %v973_v22  ;;  %v2626_v24 = vpop.f32.mrf.mxu0  ;;  %v1565_v22 = vpack.c.bf16 %v697_v42, %v697_v42 }
 0x111   : > { %v592_v25 = vpop.f32.mrf.mxu1 }
 0x112   : > { %v1001_v38 = vsel %vm885_vm1, %v978_v33, 0  ;;  %2163 = vmatmul.msk.bf16.gmra.mxu3 %vm885_vm1, %v864_v34  ;;  %v765_v41 = vadd.f32 %v2416_v17, %v592_v25  ;;  %v698_v29 = vpop.f32.mrf.mxu2  ;;  %v992_v25 = vsel %vm885_vm1, %v975_v40, 0  ;;  %v1702_v59 = vunpack.c.l.b16 %v1565_v22 }
 0x113   : > { %1007 = vmatpush.bf16.xpose.msrb.mxu3 %v1001_v38  ;;  %v699_v26 = vadd.f32 %v2546_v54, %v698_v29  ;;  %v950_v29 = vunpack.c.l.b16 %v824_v37 }
 0x114   : > { %2160 = vmatmul.msk.bf16.vlgmr.msrb.gmra.mxu0 %vm885_vm1, %v861_v30  ;;  %v797_v0 = vpack.c.bf16 %v765_v41, %v765_v41  ;;  %v969_v30 = vunpack.c.l.b16 %v791_v12  ;;  %v687_v41 = vadd.f32 %v2546_v54, %v2607_v6 }
 0x115   : > { %v1566_v8 = vpack.c.bf16 %v699_v26, %v699_v26 }
 0x116   : > { %v2648_v3 = vunpack.c.l.b16 %v797_v0  ;;  %v976_v4 = vpack.c.b16 %v970_v1, %v969_v30  ;;  %v1563_v0 = vpack.c.bf16 %v692_v28, %v692_v28  ;;  %v1561_v9 = vpack.c.bf16 %v687_v41, %v687_v41 }
 0x118   : > { %v2641_v34 = vpop.f32.mrf.mxu0  ;;  %v995_v13 = vsel %vm885_vm1, %v976_v4, 0  ;;  %v1700_v6 = vunpack.c.l.b16 %v1563_v0  ;;  %v684_v4 = vadd.f32 %v2546_v54, %v2601_v62  ;;  %v1698_v15 = vunpack.c.l.b16 %v1561_v9 }
 0x119   : > { %v594_v45 = vpop.f32.mrf.mxu1 }
 0x11a   : > { %v766_v63 = vadd.f32 %v2424_v20, %v594_v45  ;;  %v1703_v45 = vunpack.c.l.b16 %v1566_v8  ;;  %v2674_v53 = vpop.f32.mrf.mxu2 }
 0x11b   : > { %1008 = vmatpush.bf16.xpose.msrb.mxu3 %v998_v23  ;;  %v1562_v23 = vpack.c.bf16 %v689_v44, %v689_v44 }
 0x11c   : > { %v798_v39 = vpack.c.bf16 %v766_v63, %v766_v63  ;;  %v1564_v63 = vpack.c.bf16 %v694_v46, %v694_v46  ;;  %v1707_v27 = vpack.c.b16 %v1703_v45, %v1702_v59  ;;  %v825_v59 = vpack.c.bf16 %v2589_v36, %v2589_v36 }
 0x11d   : > { %v1699_v47 = vunpack.c.l.b16 %v1562_v23  ;;  %v826_v45 = vpack.c.bf16 %v2603_v10, %v2603_v10 }
 0x11e   : > { %v2650_v35 = vunpack.c.l.b16 %v798_v39  ;;  %v1701_v58 = vunpack.c.l.b16 %v1564_v63  ;;  %1728 = vmatpush.bf16.msrb.mxu1 %v1707_v27 }
 0x11f   : > { %v1705_v42 = vpack.c.b16 %v1699_v47, %v1698_v15  ;;  %v952_v15 = vunpack.c.l.b16 %v826_v45 }
 0x120   : > { %v1068_v16 = vpack.c.b16 %v2650_v35, %v2648_v3  ;;  %v492_v19 = vpop.f32.mrf.mxu0 }
 0x121   : > { %v2654_v21 = vpop.f32.mrf.mxu1  ;;  %v831_v60 = vpack.c.bf16 %v492_v19, %v492_v19  ;;  %v1706_v19 = vpack.c.b16 %v1701_v58, %v1700_v6 }
 0x122   : > { %v2688_v48 = vpop.f32.mrf.mxu2 }
 0x123   : > { %1009 = vmatpush.bf16.xpose.msrb.mxu3 %v995_v13  ;;  %v2662_v55 = vunpack.c.l.b16 %v831_v60  ;;  %v823_v13 = vpack.c.bf16 %v2551_v61, %v2551_v61  ;;  %1729 = vmatpush.bf16.msrb.mxu1 %v1706_v19 }
 0x125   : > { %v949_v22 = vunpack.c.l.b16 %v823_v13 }
 0x127   : > { %1730 = vmatpush.bf16.msrb.mxu1 %v1705_v42  ;;  %v956_v7 = vpack.c.b16 %v950_v29, %v949_v22 }
 0x128   : > { %v494_v31 = vpop.f32.mrf.mxu0 }
 0x129   : > { %v2658_v33 = vpop.f32.mrf.mxu1  ;;  %v832_v38 = vpack.c.bf16 %v494_v31, %v494_v31  ;;  %v1696_v31 = vunpack.c.l.b16 %v1559_v50 }
 0x12a   : > { %v2696_v28 = vpop.f32.mrf.mxu2 }
 0x12b   : > { %1010 = vmatpush.bf16.xpose.msrb.mxu3 %v992_v25  ;;  %v2670_v12 = vunpack.c.l.b16 %v832_v38 }
 0x12d   : > { %v1049_v1 = vpack.c.b16 %v2670_v12, %v2662_v55 }
 0x130   : > { %v497_v30 = vpop.f32.mrf.mxu0 }
 0x131   : > { %v602_v39 = vpop.f32.mrf.mxu1  ;;  %v833_v57 = vpack.c.bf16 %v497_v30, %v497_v30 }
 0x132   : > { %2164 = vmatmul.msk.bf16.vlgmr.msrb.gmra.mxu3 %vm885_vm1, %v955_v43  ;;  %v1560_v43 = vpack.c.bf16 %v684_v4, %v684_v4  ;;  %v2704_v0 = vpop.f32.mrf.mxu2  ;;  %v769_v2 = vadd.f32 %v2488_v56, %v602_v39  ;;  %v951_v4 = vunpack.c.l.b16 %v825_v59 }
 0x133   : > { %v2690_v60 = vunpack.c.l.b16 %v833_v57 }
 0x134   : > { %v1697_v25 = vunpack.c.l.b16 %v1560_v43  ;;  %v801_v37 = vpack.c.bf16 %v769_v2, %v769_v2  ;;  %v957_v43 = vpack.c.b16 %v952_v15, %v951_v4 }
 0x136   : > { %v1704_v38 = vpack.c.b16 %v1697_v25, %v1696_v31  ;;  %v1064_v29 = vunpack.c.l.b16 %v801_v37  ;;  %v767_v31 = vadd.f32 %v2513_v11, %v2654_v21 }
 0x138   : > { %v499_v32 = vpop.f32.mrf.mxu0  ;;  %1731 = vmatpush.bf16.msrb.mxu1 %v1704_v38 }
 0x139   : > { %v604_v40 = vpop.f32.mrf.mxu1  ;;  %v834_v62 = vpack.c.bf16 %v499_v32, %v499_v32  ;;  %v768_v32 = vadd.f32 %v2503_v5, %v2658_v33  ;;  %v827_v33 = vpack.c.bf16 %v2609_v14, %v2609_v14 }
 0x13a   : > { %v770_v63 = vadd.f32 %v2476_v51, %v604_v40  ;;  %v711_v42 = vpop.f32.mrf.mxu2 }
 0x13b   : > { %v2692_v26 = vunpack.c.l.b16 %v834_v62  ;;  %v800_v25 = vpack.c.bf16 %v768_v32, %v768_v32 }
 0x13c   : > { %v802_v10 = vpack.c.bf16 %v770_v63, %v770_v63 }
 0x13d   : > { %v1050_v61 = vpack.c.b16 %v2692_v26, %v2690_v60  ;;  %v1063_v59 = vunpack.c.l.b16 %v800_v25 }
 0x13e   : > { %v1065_v40 = vunpack.c.l.b16 %v802_v10 }
 0x140   : > { %v502_v46 = vpop.f32.mrf.mxu0 }
 0x141   : > { %v607_v8 = vpop.f32.mrf.mxu1  ;;  %v835_v41 = vpack.c.bf16 %v502_v46, %v502_v46 }
 0x142   : > { %2165 = vmatmul.msk.bf16.gmra.mxu3 %vm885_vm1, %v956_v7  ;;  %v771_v44 = vadd.f32 %v2466_v49, %v607_v8  ;;  %v1070_v7 = vpack.c.b16 %v1065_v40, %v1064_v29  ;;  %v828_v8 = vpack.c.bf16 %v2620_v18, %v2620_v18  ;;  %v830_v29 = vpack.c.bf16 %v2641_v34, %v2641_v34 }
 0x143   : > { %v2707_v27 = vunpack.c.l.b16 %v835_v41  ;;  %v799_v41 = vpack.c.bf16 %v767_v31, %v767_v31 }
 0x144   : > { %v803_v30 = vpack.c.bf16 %v771_v44, %v771_v44  ;;  %v713_v44 = vpop.f32.mrf.mxu2 }
 0x145   : > { %v1062_v14 = vunpack.c.l.b16 %v799_v41 }
 0x146   : > { %v1066_v57 = vunpack.c.l.b16 %v803_v30 }
 0x147   : > { %v1069_v4 = vpack.c.b16 %v1063_v59, %v1062_v14 }
 0x148   : > { %v504_v9 = vpop.f32.mrf.mxu0 }
 0x149   : > { %v609_v23 = vpop.f32.mrf.mxu1  ;;  %v836_v6 = vpack.c.bf16 %v504_v9, %v504_v9  ;;  %v1091_v9 = vsel %vm885_vm1, %v1070_v7, 0 }
 0x14a   : > { %v772_v58 = vadd.f32 %v2481_v52, %v609_v23 }
 0x14b   : > { %v2711_v36 = vunpack.c.l.b16 %v836_v6 }
 0x14c   : > { %v804_v47 = vpack.c.bf16 %v772_v58, %v772_v58  ;;  %v954_v58 = vunpack.c.l.b16 %v828_v8 }
 0x14d   : > { %v1051_v19 = vpack.c.b16 %v2711_v36, %v2707_v27 }
 0x14e   : > { %v1067_v13 = vunpack.c.l.b16 %v804_v47 }
 0x150   : > { %v1071_v50 = vpack.c.b16 %v1067_v13, %v1066_v57 }
 0x151   : > { %v507_v39 = vpop.f32.mrf.mxu0  ;;  %v612_v62 = vpop.f32.mrf.mxu1 }
 0x152   : > { %2166 = vmatmul.msk.bf16.gmra.mxu3 %vm885_vm1, %v957_v43  ;;  %v1094_v22 = vsel %vm885_vm1, %v1071_v50, 0  ;;  %v837_v38 = vpack.c.bf16 %v507_v39, %v507_v39  ;;  %v773_v46 = vadd.f32 %v2416_v17, %v612_v62  ;;  %v953_v17 = vunpack.c.l.b16 %v827_v33 }
 0x153   : > { %1100 = vmatpush.bf16.xpose.msra.mxu3 %v1094_v22  ;;  %v1088_v43 = vsel %vm885_vm1, %v1069_v4, 0  ;;  %v712_v39 = vadd.f32 %v2546_v54, %v711_v42  ;;  %v714_v62 = vadd.f32 %v2546_v54, %v713_v44  ;;  %v829_v22 = vpack.c.bf16 %v2626_v24, %v2626_v24 }
 0x154   : > { %v2727_v23 = vunpack.c.l.b16 %v837_v38  ;;  %v805_v21 = vpack.c.bf16 %v773_v46, %v773_v46  ;;  %v958_v13 = vpack.c.b16 %v954_v58, %v953_v17  ;;  %v1085_v46 = vsel %vm885_vm1, %v1068_v16, 0 }
 0x155   : > { %v707_v33 = vadd.f32 %v2546_v54, %v2696_v28  ;;  %v709_v24 = vadd.f32 %v2546_v54, %v2704_v0  ;;  %v1571_v41 = vpack.c.bf16 %v712_v39, %v712_v39  ;;  %v1572_v44 = vpack.c.bf16 %v714_v62, %v714_v62 }
 0x156   : > { %v2732_v15 = vunpack.c.l.b16 %v805_v21 }
 0x157   : > { %v1570_v21 = vpack.c.bf16 %v709_v24, %v709_v24 }
 0x159   : > { %v509_v45 = vpop.f32.mrf.mxu0  ;;  %v614_v63 = vpop.f32.mrf.mxu1  ;;  %v1784_v4 = vunpack.c.l.b16 %v1570_v21 }
 0x15a   : > { %v838_v30 = vpack.c.bf16 %v509_v45, %v509_v45  ;;  %v774_v6 = vadd.f32 %v2424_v20, %v614_v63  ;;  %v716_v20 = vpop.f32.mrf.mxu2  ;;  %v1040_v45 = vunpack.c.l.b16 %v829_v22  ;;  %v1041_v63 = vunpack.c.l.b16 %v830_v29 }
 0x15b   : > { %1101 = vmatpush.bf16.xpose.msra.mxu3 %v1091_v9  ;;  %v717_v32 = vadd.f32 %v2546_v54, %v716_v20  ;;  %v1569_v9 = vpack.c.bf16 %v707_v33, %v707_v33  ;;  %v704_v20 = vadd.f32 %v2546_v54, %v2688_v48 }
 0x15c   : > { %v2730_v2 = vunpack.c.l.b16 %v838_v30  ;;  %v806_v18 = vpack.c.bf16 %v774_v6, %v774_v6  ;;  %v1785_v30 = vunpack.c.l.b16 %v1571_v41  ;;  %v1786_v6 = vunpack.c.l.b16 %v1572_v44 }
 0x15d   : > { %v1573_v31 = vpack.c.bf16 %v717_v32, %v717_v32  ;;  %v1048_v17 = vpack.c.b16 %v1041_v63, %v1040_v45  ;;  %v1568_v62 = vpack.c.bf16 %v704_v20, %v704_v20 }
 0x15e   : > { %v1141_v47 = vpack.c.b16 %v2730_v2, %v2727_v23  ;;  %v2736_v10 = vunpack.c.l.b16 %v806_v18  ;;  %v1783_v18 = vunpack.c.l.b16 %v1569_v9 }
 0x15f   : > { %v1787_v35 = vunpack.c.l.b16 %v1573_v31 }
 0x160   : > { %v1161_v57 = vpack.c.b16 %v2736_v10, %v2732_v15 }
 0x161   : > { %v512_v37 = vpop.f32.mrf.mxu0  ;;  %v2740_v50 = vpop.f32.mrf.mxu1 }
 0x162   : > { %2167 = vmatmul.msk.bf16.gmra.mxu3 %vm885_vm1, %v958_v13  ;;  %v839_v40 = vpack.c.bf16 %v512_v37, %v512_v37  ;;  %v718_v25 = vpop.f32.mrf.mxu2  ;;  %v702_v13 = vadd.f32 %v2546_v54, %v2674_v53  ;;  %v1791_v37 = vpack.c.b16 %v1786_v6, %v1785_v30 }
 0x163   : > { %1102 = vmatpush.bf16.xpose.msra.mxu3 %v1088_v43  ;;  %v719_v42 = vadd.f32 %v2546_v54, %v718_v25 }
 0x164   : > { %v2760_v8 = vunpack.c.l.b16 %v839_v40  ;;  %v1790_v40 = vpack.c.b16 %v1784_v4, %v1783_v18  ;;  %v1567_v39 = vpack.c.bf16 %v702_v13, %v702_v13 }
 0x165   : > { %v1574_v59 = vpack.c.bf16 %v719_v42, %v719_v42 }
 0x167   : > { %v1788_v16 = vunpack.c.l.b16 %v1574_v59 }
 0x169   : > { %v514_v7 = vpop.f32.mrf.mxu0  ;;  %v2751_v38 = vpop.f32.mrf.mxu1  ;;  %v1792_v0 = vpack.c.b16 %v1788_v16, %v1787_v35 }
 0x16a   : > { %v840_v34 = vpack.c.bf16 %v514_v7, %v514_v7  ;;  %v1781_v7 = vunpack.c.l.b16 %v1567_v39  ;;  %v776_v4 = vadd.f32 %v2503_v5, %v2751_v38 }
 0x16b   : > { %1103 = vmatpush.bf16.xpose.msra.mxu3 %v1085_v46  ;;  %1813 = vmatpush.bf16.msrb.mxu2 %v1792_v0  ;;  %v1782_v46 = vunpack.c.l.b16 %v1568_v62 }
 0x16c   : > { %v2764_v3 = vunpack.c.l.b16 %v840_v34  ;;  %v808_v20 = vpack.c.bf16 %v776_v4, %v776_v4 }
 0x16d   : > { %v1789_v48 = vpack.c.b16 %v1782_v46, %v1781_v7 }
 0x16e   : > { %v1142_v28 = vpack.c.b16 %v2764_v3, %v2760_v8  ;;  %v1156_v5 = vunpack.c.l.b16 %v808_v20 }
 0x16f   : > { %1814 = vmatpush.bf16.msrb.mxu2 %v1791_v37 }
 0x171   : > { %v517_v58 = vpop.f32.mrf.mxu0  ;;  %v622_v14 = vpop.f32.mrf.mxu1 }
 0x172   : > { %2168 = vmatmul.msk.bf16.vlgmr.msra.gmra.mxu3 %vm885_vm1, %v1048_v17  ;;  %v841_v32 = vpack.c.bf16 %v517_v58, %v517_v58  ;;  %v777_v30 = vadd.f32 %v2488_v56, %v622_v14  ;;  %v775_v14 = vadd.f32 %v2513_v11, %v2740_v50 }
 0x173   : > { %1815 = vmatpush.bf16.msrb.mxu2 %v1790_v40 }
 0x174   : > { %v2775_v31 = vunpack.c.l.b16 %v841_v32  ;;  %v809_v0 = vpack.c.bf16 %v777_v30, %v777_v30  ;;  %v807_v32 = vpack.c.bf16 %v775_v14, %v775_v14 }
 0x175   : > { %v2773_v43 = vpop.f32.mrf.mxu3 }
 0x176   : > { %v1157_v13 = vunpack.c.l.b16 %v809_v0  ;;  %v1155_v62 = vunpack.c.l.b16 %v807_v32  ;;  %v1222_v11 = vsel %vm1218_vm2, %v2773_v43, -inf }
 0x177   : > { %1816 = vmatpush.bf16.msrb.mxu2 %v1789_v48 }
 0x179   : > { %v519_v22 = vpop.f32.mrf.mxu0  ;;  %v624_v29 = vpop.f32.mrf.mxu1 }
 0x17a   : > { %v842_v25 = vpack.c.bf16 %v519_v22, %v519_v22  ;;  %v778_v59 = vadd.f32 %v2476_v51, %v624_v29  ;;  %v1162_v22 = vpack.c.b16 %v1156_v5, %v1155_v62 }
 0x17c   : > { %v2777_v53 = vunpack.c.l.b16 %v842_v25 }
 0x17d   : > { %v2779_v42 = vpop.f32.mrf.mxu3 }
 0x17e   : > { %v1143_v54 = vpack.c.b16 %v2777_v53, %v2775_v31  ;;  %v1224_v29 = vsel %vm1218_vm2, %v2779_v42, -inf }
 0x181   : > { %v522_v33 = vpop.f32.mrf.mxu0  ;;  %v627_v24 = vpop.f32.mrf.mxu1 }
 0x182   : > { %2169 = vmatmul.msk.bf16.gmra.mxu3 %vm885_vm1, %v1049_v1  ;;  %v843_v41 = vpack.c.bf16 %v522_v33, %v522_v33  ;;  %v779_v44 = vadd.f32 %v2466_v49, %v627_v24  ;;  %v810_v1 = vpack.c.bf16 %v778_v59, %v778_v59  ;;  %v1181_v33 = vsel %vm885_vm1, %v1162_v22, 0 }
 0x184   : > { %v2791_v35 = vunpack.c.l.b16 %v843_v41  ;;  %v811_v16 = vpack.c.bf16 %v779_v44, %v779_v44 }
 0x185   : > { %v2787_v34 = vpop.f32.mrf.mxu3 }
 0x186   : > { %v1159_v6 = vunpack.c.l.b16 %v811_v16  ;;  %v1226_v7 = vsel %vm1218_vm2, %v2787_v34, -inf }
 0x189   : > { %v524_v45 = vpop.f32.mrf.mxu0  ;;  %v629_v63 = vpop.f32.mrf.mxu1 }
 0x18a   : > { %v844_v9 = vpack.c.bf16 %v524_v45, %v524_v45  ;;  %v780_v21 = vadd.f32 %v2481_v52, %v629_v63  ;;  %v1158_v52 = vunpack.c.l.b16 %v810_v1 }
 0x18c   : > { %v2795_v55 = vunpack.c.l.b16 %v844_v9  ;;  %v812_v12 = vpack.c.bf16 %v780_v21, %v780_v21  ;;  %v1163_v37 = vpack.c.b16 %v1158_v52, %v1157_v13  ;;  %v1178_v9 = vsel %vm885_vm1, %v1161_v57, 0 }
 0x18d   : > { %v2799_v51 = vpop.f32.mrf.mxu3 }
 0x18e   : > { %v1144_v49 = vpack.c.b16 %v2795_v55, %v2791_v35  ;;  %v1160_v17 = vunpack.c.l.b16 %v812_v12  ;;  %v1184_v26 = vsel %vm885_vm1, %v1163_v37, 0  ;;  %v1228_v48 = vsel %vm1218_vm2, %v2799_v51, -inf }
 0x190   : > { %v1164_v58 = vpack.c.b16 %v1160_v17, %v1159_v6 }
 0x191   : > { %v919_v18 = vpop.f32.mrf.mxu0 }
 0x192   : > { %2170 = vmatmul.msk.bf16.gmra.mxu3 %vm885_vm1, %v1050_v61  ;;  %v1187_v56 = vsel %vm885_vm1, %v1164_v58, 0  ;;  %v1219_v38 = vsel %vm1218_vm2, %v919_v18, -inf }
 0x193   : > { %1193 = vmatpush.bf16.xpose.msrb.mxu3 %v1187_v56 }
 0x195   : > { %v934_v39 = vpop.f32.mrf.mxu3 }
 0x196   : > { %v1230_v44 = vsel %vm1218_vm2, %v934_v39, -inf }
 0x199   : > { %v921_v40 = vpop.f32.mrf.mxu0 }
 0x19a   : > { %v1220_v60 = vsel %vm1218_vm2, %v921_v40, -inf }
 0x19b   : > { %v1221_v61 = vmax.f32 %v1219_v38, %v1220_v60  ;;  %1194 = vmatpush.bf16.xpose.msrb.mxu3 %v1184_v26 }
 0x19d   : > { %v1223_v50 = vmax.f32 %v1221_v61, %v1222_v11  ;;  %v936_v41 = vpop.f32.mrf.mxu3 }
 0x19e   : > { %v1232_v45 = vsel %vm1218_vm2, %v936_v41, -inf }
 0x19f   : > { %v1225_v25 = vmax.f32 %v1223_v50, %v1224_v29 }
 0x1a1   : > { %v1227_v46 = vmax.f32 %v1225_v25, %v1226_v7 }
 0x1a2   : > { %2171 = vmatmul.msk.bf16.gmra.mxu3 %vm885_vm1, %v1051_v19 }
 0x1a3   : > { %v1229_v24 = vmax.f32 %v1227_v46, %v1228_v48  ;;  %1195 = vmatpush.bf16.xpose.msrb.mxu3 %v1181_v33 }
 0x1a5   : > { %v1231_v59 = vmax.f32 %v1229_v24, %v1230_v44 }
 0x1a7   : > { %v1233_v63 = vmax.f32 %v1231_v59, %v1232_v45 }
 0x1a9   : > { %v1234_v16 = vrot.slane %v1233_v63, 4 }
 0x1ab   : > { %v1235_v27 = vmax.f32 %v1233_v63, %v1234_v16  ;;  %1196 = vmatpush.bf16.xpose.msrb.mxu3 %v1178_v9 }
 0x1ad   : > { %v1236_v36 = vrot.slane %v1235_v27, 2 }
 0x1af   : > { %v1237_v19 = vmax.f32 %v1235_v27, %v1236_v36 }
 0x1b1   : > { %v1238_v21 = vrot.slane %v1237_v19, 1 }
 0x1b2   : > { %2172 = vmatmul.msk.bf16.vlgmr.msrb.gmra.mxu3 %vm885_vm1, %v1141_v47 }
 0x1b3   : > { %v1239_v30 = vmax.f32 %v1237_v19, %v1238_v21 }
 0x1b5   : > { %v1303_v12 = vsub.f32 %v919_v18, %v1239_v30  ;;  %v1304_v1 = vsub.f32 %v921_v40, %v1239_v30  ;;  %v1305_v6 = vsub.f32 %v2773_v43, %v1239_v30  ;;  %v1306_v17 = vsub.f32 %v2779_v42, %v1239_v30  ;;  %v2838_v15 = vpop.f32.mrf.mxu3 }
 0x1b6   : > { %v1307_v10 = vsub.f32 %v2787_v34, %v1239_v30  ;;  %v1308_v4 = vsub.f32 %v2799_v51, %v1239_v30  ;;  %v1309_v23 = vsub.f32 %v934_v39, %v1239_v30  ;;  %v1310_v47 = vsub.f32 %v936_v41, %v1239_v30 }
 0x1b7   : > { %v1335_v57 = vmul.f32 1.442695, %v1303_v12  ;;  %v1337_v0 = vmul.f32 1.442695, %v1304_v1  ;;  %v1339_v58 = vmul.f32 1.442695, %v1305_v6 }
 0x1b8   : > { %v1341_v52 = vmul.f32 1.442695, %v1306_v17  ;;  %v1343_v2 = vmul.f32 1.442695, %v1307_v10  ;;  %v1345_v43 = vmul.f32 1.442695, %v1308_v4 }
 0x1b9   : > { %2231 = vpow2.f32 %v1335_v57  ;;  %v1347_v42 = vmul.f32 1.442695, %v1309_v23  ;;  %v1349_v14 = vmul.f32 1.442695, %v1310_v47  ;;  %v1240_v27 = vsel %vm1218_vm2, %v2838_v15, -inf }
 0x1ba   : > { %2233 = vpow2.f32 %v1337_v0 }
 0x1bb   : > { %2235 = vpow2.f32 %v1339_v58 }
 0x1bc   : > { %2237 = vpow2.f32 %v1341_v52 }
 0x1bd   : > { %v2842_v18 = vpop.f32.mrf.mxu3  ;;  %2239 = vpow2.f32 %v1343_v2 }
 0x1be   : > { %2241 = vpow2.f32 %v1345_v43  ;;  %v1241_v16 = vsel %vm1218_vm2, %v2842_v18, -inf }
 0x1bf   : > { %v2232_v56 = vpop.eup %2231  ;;  %2243 = vpow2.f32 %v1347_v42  ;;  %v1242_v53 = vmax.f32 %v1240_v27, %v1241_v16 }
 0x1c0   : > { %v2234_v34 = vpop.eup %2233  ;;  %v1399_v13 = vsel %vm1218_vm2, %v2232_v56, 0.0  ;;  %2245 = vpow2.f32 %v1349_v14 }
 0x1c1   : > { %v2845_v51 = vpop.eup %2235  ;;  %v1400_v20 = vsel %vm1218_vm2, %v2234_v34, 0.0 }
 0x1c2   : > { %v2848_v37 = vpop.eup %2237  ;;  %v1401_v32 = vadd.f32 %v1400_v20, %v1399_v13  ;;  %2173 = vmatmul.msk.bf16.gmra.mxu3 %vm885_vm1, %v1142_v28  ;;  %v1402_v40 = vsel %vm1218_vm2, %v2845_v51, 0.0 }
 0x1c3   : > { %v2240_v39 = vpop.eup %2239  ;;  %v1404_v38 = vsel %vm1218_vm2, %v2848_v37, 0.0 }
 0x1c4   : > { %v1403_v5 = vadd.f32 %v1402_v40, %v1401_v32  ;;  %v2242_v26 = vpop.eup %2241  ;;  %v1406_v62 = vsel %vm1218_vm2, %v2240_v39, 0.0 }
 0x1c5   : > { %v2858_v60 = vpop.f32.mrf.mxu3  ;;  %v2244_v11 = vpop.eup %2243  ;;  %v1408_v8 = vsel %vm1218_vm2, %v2242_v26, 0.0 }
 0x1c6   : > { %v1405_v61 = vadd.f32 %v1404_v38, %v1403_v5  ;;  %v2246_v3 = vpop.eup %2245  ;;  %v1410_v22 = vsel %vm1218_vm2, %v2244_v11, 0.0  ;;  %v1243_v31 = vsel %vm1218_vm2, %v2858_v60, -inf }
 0x1c7   : > { %v1412_v25 = vsel %vm1218_vm2, %v2246_v3, 0.0  ;;  %v1244_v6 = vmax.f32 %v1242_v53, %v1243_v31 }
 0x1c8   : > { %v1407_v50 = vadd.f32 %v1406_v62, %v1405_v61 }
 0x1ca   : > { %v1409_v28 = vadd.f32 %v1408_v8, %v1407_v50 }
 0x1cc   : > { %v1411_v29 = vadd.f32 %v1410_v22, %v1409_v28 }
 0x1cd   : > { %v2864_v7 = vpop.f32.mrf.mxu3 }
 0x1ce   : > { %v1413_v46 = vadd.f32 %v1412_v25, %v1411_v29 }
 0x1d0   : > { %v1414_v48 = vrot.slane %v1413_v46, 4 }
 0x1d2   : > { %v1415_v33 = vadd.f32 %v1414_v48, %v1413_v46  ;;  %2174 = vmatmul.msk.bf16.gmra.mxu3 %vm885_vm1, %v1143_v54  ;;  %v1245_v54 = vsel %vm1218_vm2, %v2864_v7, -inf }
 0x1d3   : > { %v1246_v58 = vmax.f32 %v1244_v6, %v1245_v54 }
 0x1d4   : > { %v1416_v24 = vrot.slane %v1415_v33, 2 }
 0x1d5   : > { %v2870_v41 = vpop.f32.mrf.mxu3 }
 0x1d6   : > { %v1417_v44 = vadd.f32 %v1416_v24, %v1415_v33  ;;  %v1247_v35 = vsel %vm1218_vm2, %v2870_v41, -inf }
 0x1d7   : > { %v1248_v42 = vmax.f32 %v1246_v58, %v1247_v35 }
 0x1d8   : > { %v1418_v59 = vrot.slane %v1417_v44, 1 }
 0x1da   : > { %v1419_v45 = vadd.f32 %v1418_v59, %v1417_v44 }
 0x1dc   : > { %2247 = vrcp.f32 %v1419_v45 }
 0x1dd   : > { %v2872_v63 = vpop.f32.mrf.mxu3 }
 0x1de   : > { %v1249_v23 = vsel %vm1218_vm2, %v2872_v63, -inf }
 0x1df   : > { %v1250_v32 = vmax.f32 %v1248_v42, %v1249_v23 }
 0x1e2   : > { %v2248_v9 = vpop.eup %2247  ;;  %2175 = vmatmul.msk.bf16.gmra.mxu3 %vm885_vm1, %v1144_v49 }
 0x1e3   : > { %v1487_v36 = vmul.f32 %v2248_v9, %v2232_v56  ;;  %v1488_v19 = vmul.f32 %v2248_v9, %v2234_v34  ;;  %v1491_v21 = vmul.f32 %v2248_v9, %v2240_v39  ;;  %v1492_v30 = vmul.f32 %v2248_v9, %v2242_v26 }
 0x1e4   : > { %v1493_v12 = vmul.f32 %v2248_v9, %v2244_v11  ;;  %v1494_v1 = vmul.f32 %v2248_v9, %v2246_v3  ;;  %v1489_v38 = vmul.f32 %v2248_v9, %v2845_v51  ;;  %v1490_v26 = vmul.f32 %v2248_v9, %v2848_v37 }
 0x1e5   : > { %v2886_v17 = vpop.f32.mrf.mxu3  ;;  %v1519_v10 = vpack.c.bf16 %v1487_v36, %v1487_v36  ;;  %v1520_v57 = vpack.c.bf16 %v1488_v19, %v1488_v19  ;;  %v1523_v55 = vpack.c.bf16 %v1491_v21, %v1491_v21  ;;  %v1524_v49 = vpack.c.bf16 %v1492_v30, %v1492_v30 }
 0x1e6   : > { %v1525_v0 = vpack.c.bf16 %v1493_v12, %v1493_v12  ;;  %v1526_v43 = vpack.c.bf16 %v1494_v1, %v1494_v1  ;;  %v1251_v14 = vsel %vm1218_vm2, %v2886_v17, -inf  ;;  %v1521_v50 = vpack.c.bf16 %v1489_v38, %v1489_v38 }
 0x1e7   : > { %v1591_v4 = vunpack.c.l.b16 %v1519_v10  ;;  %v1592_v52 = vunpack.c.l.b16 %v1520_v57  ;;  %v2892_v2 = vunpack.c.l.b16 %v1523_v55  ;;  %v2894_v47 = vunpack.c.l.b16 %v1524_v49 }
 0x1e8   : > { %v2896_v34 = vunpack.c.l.b16 %v1525_v0  ;;  %v2902_v20 = vunpack.c.l.b16 %v1526_v43  ;;  %v1252_v39 = vmax.f32 %v1250_v32, %v1251_v14  ;;  %v1522_v8 = vpack.c.bf16 %v1490_v26, %v1490_v26 }
 0x1e9   : > { %v1599_v56 = vpack.c.b16 %v1592_v52, %v1591_v4  ;;  %v1601_v13 = vpack.c.b16 %v2894_v47, %v2892_v2  ;;  %v1593_v29 = vunpack.c.l.b16 %v1521_v50 }
 0x1ea   : > { %v1602_v40 = vpack.c.b16 %v2902_v20, %v2896_v34  ;;  %v1594_v25 = vunpack.c.l.b16 %v1522_v8 }
 0x1eb   : > { %2176 = vmatmul.msk.bf16.vlgmr.msra.gmra.mxu0 %vm1218_vm2, %v1599_v56 }
 0x1ec   : > { %v1600_v33 = vpack.c.b16 %v1594_v25, %v1593_v29 }
 0x1ed   : > { %v1029_v5 = vpop.f32.mrf.mxu3 }
 0x1ee   : > { %v1253_v61 = vsel %vm1218_vm2, %v1029_v5, -inf }
 0x1ef   : > { %v1254_v62 = vmax.f32 %v1252_v39, %v1253_v61 }
 0x1f1   : > { %v1255_v11 = vrot.slane %v1254_v62, 4 }
 0x1f3   : > { %v1256_v3 = vmax.f32 %v1254_v62, %v1255_v11 }
 0x1f5   : > { %v1257_v28 = vrot.slane %v1256_v3, 2  ;;  %v2910_v22 = vpop.f32.mrf.mxu3 }
 0x1f6   : > { %v1261_v25 = vsel %vm1218_vm2, %v2910_v22, -inf }
 0x1f7   : > { %v1258_v46 = vmax.f32 %v1256_v3, %v1257_v28 }
 0x1f9   : > { %v1259_v48 = vrot.slane %v1258_v46, 1 }
 0x1fb   : > { %v1260_v24 = vmax.f32 %v1258_v46, %v1259_v48  ;;  %2177 = vmatmul.msk.bf16.gmra.mxu0 %vm1218_vm2, %v1600_v33 }
 0x1fd   : > { %v1311_v51 = vsub.f32 %v2838_v15, %v1260_v24  ;;  %v1312_v37 = vsub.f32 %v2842_v18, %v1260_v24  ;;  %v1313_v44 = vsub.f32 %v2858_v60, %v1260_v24  ;;  %v1314_v59 = vsub.f32 %v2864_v7, %v1260_v24  ;;  %v2917_v45 = vpop.f32.mrf.mxu3  ;;  %v2922_v7 = vpop.f32.mrf.mxu2 }
 0x1fe   : > { %v1315_v16 = vsub.f32 %v2870_v41, %v1260_v24  ;;  %v1316_v53 = vsub.f32 %v2872_v63, %v1260_v24  ;;  %v1317_v36 = vsub.f32 %v2886_v17, %v1260_v24  ;;  %v1318_v18 = vsub.f32 %v1029_v5, %v1260_v24 }
 0x1ff   : > { %v1351_v9 = vmul.f32 1.442695, %v1311_v51  ;;  %v1353_v27 = vmul.f32 1.442695, %v1312_v37  ;;  %v1355_v31 = vmul.f32 1.442695, %v1313_v44 }
 0x200   : > { %v1357_v54 = vmul.f32 1.442695, %v1314_v59  ;;  %v1359_v15 = vmul.f32 1.442695, %v1315_v16  ;;  %v1361_v60 = vmul.f32 1.442695, %v1316_v53 }
 0x201   : > { %2249 = vpow2.f32 %v1351_v9  ;;  %v1363_v41 = vmul.f32 1.442695, %v1317_v36  ;;  %v1365_v63 = vmul.f32 1.442695, %v1318_v18  ;;  %v1262_v28 = vsel %vm1218_vm2, %v2917_v45, -inf }
 0x202   : > { %2251 = vpow2.f32 %v1353_v27  ;;  %v1263_v34 = vmax.f32 %v1261_v25, %v1262_v28 }
 0x203   : > { %2253 = vpow2.f32 %v1355_v31 }
 0x204   : > { %2255 = vpow2.f32 %v1357_v54 }
 0x205   : > { %v2924_v19 = vpop.f32.mrf.mxu3  ;;  %2257 = vpow2.f32 %v1359_v15  ;;  %v2935_v49 = vpop.f32.mrf.mxu2 }
 0x206   : > { %2259 = vpow2.f32 %v1361_v60  ;;  %v1264_v46 = vsel %vm1218_vm2, %v2924_v19, -inf }
 0x207   : > { %v2250_v21 = vpop.eup %2249  ;;  %2261 = vpow2.f32 %v1363_v41 }
 0x208   : > { %v2252_v30 = vpop.eup %2251  ;;  %v1420_v12 = vsel %vm1218_vm2, %v2250_v21, 0.0  ;;  %2263 = vpow2.f32 %v1365_v63 }
 0x209   : > { %v2927_v1 = vpop.eup %2253  ;;  %v1421_v6 = vsel %vm1218_vm2, %v2252_v30, 0.0 }
 0x20a   : > { %v2930_v17 = vpop.eup %2255  ;;  %v1422_v10 = vadd.f32 %v1421_v6, %v1420_v12  ;;  %v1423_v57 = vsel %vm1218_vm2, %v2927_v1, 0.0 }
 0x20b   : > { %2178 = vmatmul.msk.bf16.gmra.mxu0 %vm1218_vm2, %v1601_v13  ;;  %v2258_v35 = vpop.eup %2257  ;;  %v1425_v0 = vsel %vm1218_vm2, %v2930_v17, 0.0 }
 0x20c   : > { %v1424_v55 = vadd.f32 %v1423_v57, %v1422_v10  ;;  %v2260_v4 = vpop.eup %2259  ;;  %v1427_v23 = vsel %vm1218_vm2, %v2258_v35, 0.0 }
 0x20d   : > { %v2939_v58 = vpop.f32.mrf.mxu3  ;;  %v2262_v2 = vpop.eup %2261  ;;  %v1429_v43 = vsel %vm1218_vm2, %v2260_v4, 0.0 }
 0x20e   : > { %v1426_v52 = vadd.f32 %v1425_v0, %v1424_v55  ;;  %v2264_v42 = vpop.eup %2263  ;;  %v1431_v14 = vsel %vm1218_vm2, %v2262_v2, 0.0  ;;  %v2944_v32 = vpop.f32.mrf.mxu2  ;;  %v1266_v20 = vsel %vm1218_vm2, %v2939_v58, -inf }
 0x20f   : > { %v1433_v39 = vsel %vm1218_vm2, %v2264_v42, 0.0 }
 0x210   : > { %v1428_v47 = vadd.f32 %v1427_v23, %v1426_v52 }
 0x212   : > { %v1430_v56 = vadd.f32 %v1429_v43, %v1428_v47 }
 0x214   : > { %v1432_v13 = vadd.f32 %v1431_v14, %v1430_v56 }
 0x215   : > { %v2947_v5 = vpop.f32.mrf.mxu3 }
 0x216   : > { %v1434_v38 = vadd.f32 %v1433_v39, %v1432_v13  ;;  %v2953_v11 = vpop.f32.mrf.mxu2  ;;  %v1268_v24 = vsel %vm1218_vm2, %v2947_v5, -inf }
 0x218   : > { %v1435_v26 = vrot.slane %v1434_v38, 4 }
 0x21a   : > { %v1436_v61 = vadd.f32 %v1435_v26, %v1434_v38 }
 0x21b   : > { %2179 = vmatmul.msk.bf16.gmra.mxu0 %vm1218_vm2, %v1602_v40  ;;  %v1265_v40 = vmax.f32 %v1263_v34, %v1264_v46 }
 0x21c   : > { %v1437_v62 = vrot.slane %v1436_v61, 2 }
 0x21d   : > { %v2955_v50 = vpop.f32.mrf.mxu3  ;;  %v1267_v51 = vmax.f32 %v1265_v40, %v1266_v20 }
 0x21e   : > { %v1438_v8 = vadd.f32 %v1437_v62, %v1436_v61  ;;  %v2967_v33 = vpop.f32.mrf.mxu2  ;;  %v1270_v37 = vsel %vm1218_vm2, %v2955_v50, -inf }
 0x21f   : > { %v1269_v44 = vmax.f32 %v1267_v51, %v1268_v24  ;;  %v2303_v51 = vld [vmem:[%s3194_s4] ss:$0 sm:$0xff] }
 0x220   : > { %v1439_v3 = vrot.slane %v1438_v8, 1 }
 0x221   : > { %v1271_v9 = vmax.f32 %v1269_v44, %v1270_v37  ;;  %v722_v37 = vadd.f32 %v2303_v51, %v2922_v7  ;;  %v724_v44 = vadd.f32 %v2303_v51, %v2935_v49 }
 0x222   : > { %v1440_v29 = vadd.f32 %v1439_v3, %v1438_v8 }
 0x224   : > { %2265 = vrcp.f32 %v1440_v29 }
 0x225   : > { %v2965_v48 = vpop.f32.mrf.mxu3 }
 0x226   : > { %v1272_v16 = vsel %vm1218_vm2, %v2965_v48, -inf  ;;  %v733_v12 = vpop.f32.mrf.mxu2 }
 0x227   : > { %v1273_v18 = vmax.f32 %v1271_v9, %v1272_v16 }
 0x22a   : > { %v2266_v59 = vpop.eup %2265 }
 0x22b   : > { %v1495_v27 = vmul.f32 %v2266_v59, %v2250_v21  ;;  %v1496_v31 = vmul.f32 %v2266_v59, %v2252_v30  ;;  %v1499_v53 = vmul.f32 %v2266_v59, %v2258_v35  ;;  %v1500_v54 = vmul.f32 %v2266_v59, %v2260_v4 }
 0x22c   : > { %v1501_v36 = vmul.f32 %v2266_v59, %v2262_v2  ;;  %v1502_v15 = vmul.f32 %v2266_v59, %v2264_v42  ;;  %v1497_v14 = vmul.f32 %v2266_v59, %v2927_v1  ;;  %v1498_v13 = vmul.f32 %v2266_v59, %v2930_v17 }
 0x22d   : > { %v2975_v60 = vpop.f32.mrf.mxu3  ;;  %v1527_v41 = vpack.c.bf16 %v1495_v27, %v1495_v27  ;;  %v1528_v63 = vpack.c.bf16 %v1496_v31, %v1496_v31  ;;  %v1531_v10 = vpack.c.bf16 %v1499_v53, %v1499_v53  ;;  %v1532_v57 = vpack.c.bf16 %v1500_v54, %v1500_v54 }
 0x22e   : > { %v1274_v6 = vsel %vm1218_vm2, %v2975_v60, -inf  ;;  %v1533_v55 = vpack.c.bf16 %v1501_v36, %v1501_v36  ;;  %v1534_v4 = vpack.c.bf16 %v1502_v15, %v1502_v15  ;;  %v736_v61 = vpop.f32.mrf.mxu2  ;;  %v1529_v8 = vpack.c.bf16 %v1497_v14, %v1497_v14 }
 0x22f   : > { %v1275_v0 = vmax.f32 %v1273_v18, %v1274_v6  ;;  %v1676_v52 = vunpack.c.l.b16 %v1527_v41  ;;  %v1677_v21 = vunpack.c.l.b16 %v1528_v63  ;;  %v2979_v30 = vunpack.c.l.b16 %v1531_v10 }
 0x230   : > { %v2981_v35 = vunpack.c.l.b16 %v1532_v57  ;;  %v2983_v47 = vunpack.c.l.b16 %v1533_v55  ;;  %v2987_v42 = vunpack.c.l.b16 %v1534_v4  ;;  %v1530_v3 = vpack.c.bf16 %v1498_v13, %v1498_v13 }
 0x231   : > { %v1276_v23 = vrot.slane %v1275_v0, 4  ;;  %v1684_v2 = vpack.c.b16 %v1677_v21, %v1676_v52  ;;  %v1678_v25 = vunpack.c.l.b16 %v1529_v8  ;;  %v737_v9 = vadd.f32 %v2303_v51, %v736_v61 }
 0x232   : > { %v1686_v43 = vpack.c.b16 %v2981_v35, %v2979_v30  ;;  %v1687_v39 = vpack.c.b16 %v2987_v42, %v2983_v47  ;;  %v1679_v46 = vunpack.c.l.b16 %v1530_v3  ;;  %v729_v53 = vadd.f32 %v2303_v51, %v2953_v11 }
 0x233   : > { %v1277_v56 = vmax.f32 %v1275_v0, %v1276_v23  ;;  %2180 = vmatmul.msk.bf16.vlgmr.msrb.gmra.mxu1 %vm1218_vm2, %v1684_v2  ;;  %v734_v36 = vadd.f32 %v2303_v51, %v733_v12  ;;  %v1581_v18 = vpack.c.bf16 %v737_v9, %v737_v9  ;;  %v1575_v0 = vpack.c.bf16 %v722_v37, %v722_v37 }
 0x234   : > { %v1685_v7 = vpack.c.b16 %v1679_v46, %v1678_v25  ;;  %v1576_v4 = vpack.c.bf16 %v724_v44, %v724_v44 }
 0x235   : > { %v1278_v38 = vrot.slane %v1277_v56, 2  ;;  %v2994_v26 = vpop.f32.mrf.mxu3  ;;  %v1580_v11 = vpack.c.bf16 %v734_v36, %v734_v36  ;;  %v1872_v6 = vunpack.c.l.b16 %v1581_v18  ;;  %v1866_v25 = vunpack.c.l.b16 %v1575_v0 }
 0x236   : > { %v738_v24 = vpop.f32.mrf.mxu2  ;;  %v1867_v46 = vunpack.c.l.b16 %v1576_v4 }
 0x237   : > { %v1279_v62 = vmax.f32 %v1277_v56, %v1278_v38  ;;  %v739_v31 = vadd.f32 %v2303_v51, %v738_v24  ;;  %v1871_v55 = vunpack.c.l.b16 %v1580_v11 }
 0x239   : > { %v1280_v28 = vrot.slane %v1279_v62, 1 }
 0x23b   : > { %v1281_v29 = vmax.f32 %v1279_v62, %v1280_v28 }
 0x23d   : > { %v1319_v34 = vsub.f32 %v2910_v22, %v1281_v29  ;;  %v1320_v1 = vsub.f32 %v2917_v45, %v1281_v29  ;;  %v1321_v17 = vsub.f32 %v2924_v19, %v1281_v29  ;;  %v1322_v20 = vsub.f32 %v2939_v58, %v1281_v29  ;;  %v3000_v40 = vpop.f32.mrf.mxu3 }
 0x23e   : > { %v1323_v59 = vsub.f32 %v2947_v5, %v1281_v29  ;;  %v727_v19 = vadd.f32 %v2303_v51, %v2944_v32  ;;  %v1324_v58 = vsub.f32 %v2955_v50, %v1281_v29  ;;  %v1325_v54 = vsub.f32 %v2965_v48, %v1281_v29 }
 0x23f   : > { %v1367_v22 = vmul.f32 1.442695, %v1319_v34  ;;  %v1369_v16 = vmul.f32 1.442695, %v1320_v1  ;;  %v1371_v45 = vmul.f32 1.442695, %v1321_v17  ;;  %v732_v5 = vadd.f32 %v2303_v51, %v2967_v33 }
 0x240   : > { %v1373_v27 = vmul.f32 1.442695, %v1322_v20  ;;  %v1375_v49 = vmul.f32 1.442695, %v1323_v59  ;;  %v1326_v15 = vsub.f32 %v2975_v60, %v1281_v29  ;;  %v1582_v32 = vpack.c.bf16 %v739_v31, %v739_v31 }
 0x241   : > { %2267 = vpow2.f32 %v1367_v22  ;;  %v1377_v50 = vmul.f32 1.442695, %v1324_v58  ;;  %v1579_v41 = vpack.c.bf16 %v732_v5, %v732_v5  ;;  %v1577_v63 = vpack.c.bf16 %v727_v19, %v727_v19 }
 0x242   : > { %2269 = vpow2.f32 %v1369_v16  ;;  %v1578_v48 = vpack.c.bf16 %v729_v53, %v729_v53  ;;  %v1873_v57 = vunpack.c.l.b16 %v1582_v32  ;;  %v1379_v33 = vmul.f32 1.442695, %v1325_v54 }
 0x243   : > { %2271 = vpow2.f32 %v1371_v45  ;;  %2181 = vmatmul.msk.bf16.gmra.mxu1 %vm1218_vm2, %v1685_v7  ;;  %v1870_v12 = vunpack.c.l.b16 %v1579_v41  ;;  %v1381_v23 = vmul.f32 1.442695, %v1326_v15  ;;  %v1868_v14 = vunpack.c.l.b16 %v1577_v63 }
 0x244   : > { %2273 = vpow2.f32 %v1373_v27  ;;  %v1877_v52 = vpack.c.b16 %v1873_v57, %v1872_v6  ;;  %v1869_v13 = vunpack.c.l.b16 %v1578_v48  ;;  %v1874_v59 = vpack.c.b16 %v1867_v46, %v1866_v25 }
 0x245   : > { %v3015_v10 = vpop.f32.mrf.mxu3  ;;  %2275 = vpow2.f32 %v1375_v49  ;;  %v1876_v61 = vpack.c.b16 %v1871_v55, %v1870_v12  ;;  %v1283_v30 = vsel %vm1218_vm2, %v3000_v40, -inf }
 0x246   : > { %2277 = vpow2.f32 %v1377_v50  ;;  %1898 = vmatpush.bf16.msra.mxu3 %v1877_v52  ;;  %v1875_v34 = vpack.c.b16 %v1869_v13, %v1868_v14  ;;  %v1285_v15 = vsel %vm1218_vm2, %v3015_v10, -inf }
 0x247   : > { %v3017_v60 = vpop.eup %2267  ;;  %2279 = vpow2.f32 %v1379_v33 }
 0x248   : > { %v3019_v21 = vpop.eup %2269  ;;  %v1441_v2 = vsel %vm1218_vm2, %v3017_v60, 0.0  ;;  %2281 = vpow2.f32 %v1381_v23 }
 0x249   : > { %v3023_v56 = vpop.eup %2271  ;;  %v1442_v38 = vsel %vm1218_vm2, %v3019_v21, 0.0 }
 0x24a   : > { %v3027_v62 = vpop.eup %2273  ;;  %v1443_v8 = vadd.f32 %v1442_v38, %v1441_v2  ;;  %v1444_v3 = vsel %vm1218_vm2, %v3023_v56, 0.0  ;;  %1899 = vmatpush.bf16.msra.mxu3 %v1876_v61 }
 0x24b   : > { %v2276_v28 = vpop.eup %2275  ;;  %v1446_v1 = vsel %vm1218_vm2, %v3027_v62, 0.0 }
 0x24c   : > { %v1445_v29 = vadd.f32 %v1444_v3, %v1443_v8  ;;  %v2278_v20 = vpop.eup %2277  ;;  %v1448_v51 = vsel %vm1218_vm2, %v2276_v28, 0.0 }
 0x24d   : > { %v3033_v17 = vpop.f32.mrf.mxu3  ;;  %v2280_v37 = vpop.eup %2279  ;;  %v1450_v22 = vsel %vm1218_vm2, %v2278_v20, 0.0 }
 0x24e   : > { %v1447_v24 = vadd.f32 %v1446_v1, %v1445_v29  ;;  %1900 = vmatpush.bf16.msra.mxu3 %v1875_v34  ;;  %v2282_v16 = vpop.eup %2281  ;;  %v1452_v9 = vsel %vm1218_vm2, %v2280_v37, 0.0  ;;  %v1287_v32 = vsel %vm1218_vm2, %v3033_v17, -inf }
 0x24f   : > { %v1454_v58 = vsel %vm1218_vm2, %v2282_v16, 0.0 }
 0x250   : > { %v1449_v44 = vadd.f32 %v1448_v51, %v1447_v24 }
 0x252   : > { %v1451_v45 = vadd.f32 %v1450_v22, %v1449_v44  ;;  %1901 = vmatpush.bf16.msra.mxu3 %v1874_v59 }
 0x253   : > { %2182 = vmatmul.msk.bf16.gmra.mxu1 %vm1218_vm2, %v1686_v43  ;;  %v1282_v43 = vsel %vm1218_vm2, %v2994_v26, -inf }
 0x254   : > { %v1453_v19 = vadd.f32 %v1452_v9, %v1451_v45  ;;  %v1284_v18 = vmax.f32 %v1282_v43, %v1283_v30 }
 0x255   : > { %v3043_v27 = vpop.f32.mrf.mxu3 }
 0x256   : > { %v1455_v31 = vadd.f32 %v1454_v58, %v1453_v19  ;;  %v1286_v50 = vmax.f32 %v1284_v18, %v1285_v15  ;;  %v1289_v11 = vsel %vm1218_vm2, %v3043_v27, -inf }
 0x258   : > { %v1456_v53 = vrot.slane %v1455_v31, 4  ;;  %v1288_v47 = vmax.f32 %v1286_v50, %v1287_v32 }
 0x25a   : > { %v1457_v54 = vadd.f32 %v1456_v53, %v1455_v31  ;;  %v1290_v63 = vmax.f32 %v1288_v47, %v1289_v11 }
 0x25c   : > { %v1458_v7 = vrot.slane %v1457_v54, 2 }
 0x25d   : > { %v3045_v49 = vpop.f32.mrf.mxu3 }
 0x25e   : > { %v1459_v5 = vadd.f32 %v1458_v7, %v1457_v54  ;;  %v1291_v42 = vsel %vm1218_vm2, %v3045_v49, -inf }
 0x25f   : > { %v1292_v33 = vmax.f32 %v1290_v63, %v1291_v42 }
 0x260   : > { %v1460_v36 = vrot.slane %v1459_v5, 1 }
 0x262   : > { %v1461_v35 = vadd.f32 %v1460_v36, %v1459_v5 }
 0x263   : > { %2183 = vmatmul.msk.bf16.gmra.mxu1 %vm1218_vm2, %v1687_v39 }
 0x264   : > { %2283 = vrcp.f32 %v1461_v35 }
 0x265   : > { %v3060_v41 = vpop.f32.mrf.mxu3 }
 0x266   : > { %v1293_v6 = vsel %vm1218_vm2, %v3060_v41, -inf }
 0x267   : > { %v1294_v23 = vmax.f32 %v1292_v33, %v1293_v6 }
 0x268   : > { %v1648_v39 = vpop.f32.mrf.mxu0 }
 0x269   : > { %1923 = vst.msk [vmem:[%s3067_s17] sm:$0xff] %vm389_vm0, %v1648_v39 }
 0x26a   : > { %v2284_v48 = vpop.eup %2283 }
 0x26b   : > { %v1510_v57 = vmul.f32 %v2284_v48, %v2282_v16  ;;  %v1503_v12 = vmul.f32 %v2284_v48, %v3017_v60  ;;  %v1504_v55 = vmul.f32 %v2284_v48, %v3019_v21  ;;  %v1507_v0 = vmul.f32 %v2284_v48, %v2276_v28 }
 0x26c   : > { %v1508_v52 = vmul.f32 %v2284_v48, %v2278_v20  ;;  %v1509_v4 = vmul.f32 %v2284_v48, %v2280_v37  ;;  %v1505_v59 = vmul.f32 %v2284_v48, %v3023_v56  ;;  %v1506_v22 = vmul.f32 %v2284_v48, %v3027_v62 }
 0x26d   : > { %v1215_v2 = vpop.f32.mrf.mxu3  ;;  %v1535_v14 = vpack.c.bf16 %v1503_v12, %v1503_v12  ;;  %v1536_v13 = vpack.c.bf16 %v1504_v55, %v1504_v55  ;;  %v1542_v38 = vpack.c.bf16 %v1510_v57, %v1510_v57  ;;  %v1539_v8 = vpack.c.bf16 %v1507_v0, %v1507_v0 }
 0x26e   : > { %v1295_v61 = vsel %vm1218_vm2, %v1215_v2, -inf  ;;  %v1540_v3 = vpack.c.bf16 %v1508_v52, %v1508_v52  ;;  %v1541_v28 = vpack.c.bf16 %v1509_v4, %v1509_v4  ;;  %v1537_v58 = vpack.c.bf16 %v1505_v59, %v1505_v59 }
 0x26f   : > { %v1296_v29 = vmax.f32 %v1294_v23, %v1295_v61  ;;  %v1761_v25 = vunpack.c.l.b16 %v1535_v14  ;;  %v1762_v46 = vunpack.c.l.b16 %v1536_v13  ;;  %v3078_v60 = vunpack.c.l.b16 %v1539_v8 }
 0x270   : > { %v1650_v34 = vpop.f32.mrf.mxu0  ;;  %v3080_v21 = vunpack.c.l.b16 %v1540_v3  ;;  %v3084_v24 = vunpack.c.l.b16 %v1542_v38  ;;  %v3088_v37 = vunpack.c.l.b16 %v1541_v28  ;;  %v1538_v31 = vpack.c.bf16 %v1506_v22, %v1506_v22 }
 0x271   : > { %v1297_v1 = vrot.slane %v1296_v29, 4  ;;  %1924 = vst.msk [vmem:[%s3067_s17 + $0x8] sm:$0xff] %vm389_vm0, %v1650_v34  ;;  %v1769_v20 = vpack.c.b16 %v1762_v46, %v1761_v25  ;;  %v1763_v7 = vunpack.c.l.b16 %v1537_v58 }
 0x272   : > { %v1771_v51 = vpack.c.b16 %v3080_v21, %v3078_v60  ;;  %v1772_v16 = vpack.c.b16 %v3084_v24, %v3088_v37  ;;  %v1764_v5 = vunpack.c.l.b16 %v1538_v31 }
 0x273   : > { %v1298_v44 = vmax.f32 %v1296_v29, %v1297_v1  ;;  %2184 = vmatmul.msk.bf16.vlgmr.msrb.gmra.mxu2 %vm1218_vm2, %v1769_v20 }
 0x274   : > { %v1770_v47 = vpack.c.b16 %v1764_v5, %v1763_v7 }
 0x275   : > { %v1299_v45 = vrot.slane %v1298_v44, 2 }
 0x277   : > { %v1300_v9 = vmax.f32 %v1298_v44, %v1299_v45 }
 0x278   : > { %v1653_v19 = vpop.f32.mrf.mxu0 }
 0x279   : > { %v1301_v53 = vrot.slane %v1300_v9, 1  ;;  %1925 = vst.msk [vmem:[%s3067_s17 + $0x10] sm:$0xff] %vm389_vm0, %v1653_v19 }
 0x27b   : > { %v1302_v54 = vmax.f32 %v1300_v9, %v1301_v53 }
 0x27d   : > { %v1327_v36 = vsub.f32 %v2994_v26, %v1302_v54  ;;  %v1328_v56 = vsub.f32 %v3000_v40, %v1302_v54  ;;  %v1329_v62 = vsub.f32 %v3015_v10, %v1302_v54  ;;  %v1330_v30 = vsub.f32 %v3033_v17, %v1302_v54 }
 0x27e   : > { %v1331_v35 = vsub.f32 %v3043_v27, %v1302_v54  ;;  %v1332_v32 = vsub.f32 %v3045_v49, %v1302_v54  ;;  %v1333_v26 = vsub.f32 %v3060_v41, %v1302_v54  ;;  %v1334_v10 = vsub.f32 %v1215_v2, %v1302_v54 }
 0x27f   : > { %v1383_v43 = vmul.f32 1.442695, %v1327_v36  ;;  %v1385_v15 = vmul.f32 1.442695, %v1328_v56  ;;  %v1387_v18 = vmul.f32 1.442695, %v1329_v62 }
 0x280   : > { %v1389_v50 = vmul.f32 1.442695, %v1330_v30  ;;  %v1655_v11 = vpop.f32.mrf.mxu0  ;;  %v1391_v40 = vmul.f32 1.442695, %v1331_v35  ;;  %v1393_v17 = vmul.f32 1.442695, %v1332_v32 }
 0x281   : > { %2285 = vpow2.f32 %v1383_v43  ;;  %1926 = vst.msk [vmem:[%s3067_s17 + $0x18] sm:$0xff] %vm389_vm0, %v1655_v11  ;;  %v1395_v27 = vmul.f32 1.442695, %v1333_v26  ;;  %v1397_v39 = vmul.f32 1.442695, %v1334_v10 }
 0x282   : > { %2287 = vpow2.f32 %v1385_v15 }
 0x283   : > { %2289 = vpow2.f32 %v1387_v18  ;;  %2185 = vmatmul.msk.bf16.gmra.mxu2 %vm1218_vm2, %v1770_v47 }
 0x284   : > { %2291 = vpow2.f32 %v1389_v50 }
 0x285   : > { %2293 = vpow2.f32 %v1391_v40 }
 0x286   : > { %2295 = vpow2.f32 %v1393_v17 }
 0x287   : > { %v2286_v49 = vpop.eup %2285  ;;  %2297 = vpow2.f32 %v1395_v27 }
 0x288   : > { %v2288_v42 = vpop.eup %2287  ;;  %v1462_v63 = vsel %vm1218_vm2, %v2286_v49, 0.0  ;;  %v1658_v48 = vpop.f32.mrf.mxu0  ;;  %2299 = vpow2.f32 %v1397_v39 }
 0x289   : > { %v3108_v6 = vpop.eup %2289  ;;  %v1463_v41 = vsel %vm1218_vm2, %v2288_v42, 0.0  ;;  %1927 = vst.msk [vmem:[%s3067_s17 + $0x20] sm:$0xff] %vm389_vm0, %v1658_v48 }
 0x28a   : > { %v2292_v57 = vpop.eup %2291  ;;  %v1464_v33 = vadd.f32 %v1463_v41, %v1462_v63  ;;  %v1465_v12 = vsel %vm1218_vm2, %v3108_v6, 0.0 }
 0x28b   : > { %v2294_v55 = vpop.eup %2293  ;;  %v1467_v52 = vsel %vm1218_vm2, %v2292_v57, 0.0 }
 0x28c   : > { %v1466_v0 = vadd.f32 %v1465_v12, %v1464_v33  ;;  %v2296_v4 = vpop.eup %2295  ;;  %v1469_v2 = vsel %vm1218_vm2, %v2294_v55, 0.0 }
 0x28d   : > { %v2298_v14 = vpop.eup %2297  ;;  %v1471_v61 = vsel %vm1218_vm2, %v2296_v4, 0.0 }
 0x28e   : > { %v1468_v23 = vadd.f32 %v1467_v52, %v1466_v0  ;;  %v2300_v8 = vpop.eup %2299  ;;  %v1473_v29 = vsel %vm1218_vm2, %v2298_v14, 0.0 }
 0x28f   : > { %v1475_v46 = vsel %vm1218_vm2, %v2300_v8, 0.0 }
 0x290   : > { %v1470_v13 = vadd.f32 %v1469_v2, %v1468_v23  ;;  %v1660_v38 = vpop.f32.mrf.mxu0 }
 0x291   : > { %1928 = vst.msk [vmem:[%s3067_s17 + $0x28] sm:$0xff] %vm389_vm0, %v1660_v38 }
 0x292   : > { %v1472_v3 = vadd.f32 %v1471_v61, %v1470_v13 }
 0x293   : > { %2186 = vmatmul.msk.bf16.gmra.mxu2 %vm1218_vm2, %v1771_v51 }
 0x294   : > { %v1474_v25 = vadd.f32 %v1473_v29, %v1472_v3 }
 0x296   : > { %v1476_v34 = vadd.f32 %v1475_v46, %v1474_v25 }
 0x298   : > { %v1477_v28 = vrot.slane %v1476_v34, 4  ;;  %v1663_v1 = vpop.f32.mrf.mxu0 }
 0x299   : > { %1929 = vst.msk [vmem:[%s3067_s17 + $0x30] sm:$0xff] %vm389_vm0, %v1663_v1 }
 0x29a   : > { %v1478_v20 = vadd.f32 %v1477_v28, %v1476_v34 }
 0x29c   : > { %v1479_v44 = vrot.slane %v1478_v20, 2 }
 0x29e   : > { %v1480_v59 = vadd.f32 %v1479_v44, %v1478_v20 }
 0x2a0   : > { %v1481_v22 = vrot.slane %v1480_v59, 1  ;;  %v1665_v45 = vpop.f32.mrf.mxu0 }
 0x2a1   : > { %1930 = vst.msk [vmem:[%s3067_s17 + $0x38] sm:$0xff] %vm389_vm0, %v1665_v45 }
 0x2a2   : > { %v1482_v9 = vadd.f32 %v1481_v22, %v1480_v59 }
 0x2a3   : > { %2187 = vmatmul.msk.bf16.gmra.mxu2 %vm1218_vm2, %v1772_v16 }
 0x2a4   : > { %2301 = vrcp.f32 %v1482_v9 }
 0x2aa   : > { %v2302_v60 = vpop.eup %2301 }
 0x2ab   : > { %v1518_v21 = vmul.f32 %v2302_v60, %v2300_v8  ;;  %v1511_v51 = vmul.f32 %v2302_v60, %v2286_v49  ;;  %v1512_v19 = vmul.f32 %v2302_v60, %v2288_v42  ;;  %v1515_v58 = vmul.f32 %v2302_v60, %v2294_v55 }
 0x2ac   : > { %v1516_v31 = vmul.f32 %v2302_v60, %v2296_v4  ;;  %v1517_v53 = vmul.f32 %v2302_v60, %v2298_v14  ;;  %v1513_v11 = vmul.f32 %v2302_v60, %v3108_v6  ;;  %v1514_v47 = vmul.f32 %v2302_v60, %v2292_v57 }
 0x2ad   : > { %v1543_v54 = vpack.c.bf16 %v1511_v51, %v1511_v51  ;;  %v1544_v7 = vpack.c.bf16 %v1512_v19, %v1512_v19  ;;  %v1550_v5 = vpack.c.bf16 %v1518_v21, %v1518_v21  ;;  %v1547_v36 = vpack.c.bf16 %v1515_v58, %v1515_v58 }
 0x2ae   : > { %v1548_v56 = vpack.c.bf16 %v1516_v31, %v1516_v31  ;;  %v1549_v62 = vpack.c.bf16 %v1517_v53, %v1517_v53  ;;  %v1545_v40 = vpack.c.bf16 %v1513_v11, %v1513_v11  ;;  %v1546_v10 = vpack.c.bf16 %v1514_v47, %v1514_v47 }
 0x2af   : > { %v1846_v30 = vunpack.c.l.b16 %v1543_v54  ;;  %v1847_v24 = vunpack.c.l.b16 %v1544_v7  ;;  %v1853_v37 = vunpack.c.l.b16 %v1550_v5  ;;  %v1850_v35 = vunpack.c.l.b16 %v1547_v36 }
 0x2b0   : > { %v1733_v16 = vpop.f32.mrf.mxu1  ;;  %v1851_v43 = vunpack.c.l.b16 %v1548_v56  ;;  %v1852_v15 = vunpack.c.l.b16 %v1549_v62  ;;  %v1848_v17 = vunpack.c.l.b16 %v1545_v40  ;;  %v1849_v27 = vunpack.c.l.b16 %v1546_v10 }
 0x2b1   : > { %1931 = vst.msk [vmem:[%s3067_s17 + $0x40] sm:$0xff] %vm389_vm0, %v1733_v16  ;;  %v1854_v18 = vpack.c.b16 %v1847_v24, %v1846_v30 }
 0x2b2   : > { %v1856_v32 = vpack.c.b16 %v1851_v43, %v1850_v35  ;;  %v1857_v50 = vpack.c.b16 %v1853_v37, %v1852_v15  ;;  %v1855_v42 = vpack.c.b16 %v1849_v27, %v1848_v17 }
 0x2b3   : > { %2188 = vmatmul.msk.bf16.vlgmr.msra.gmra.mxu3 %vm1218_vm2, %v1854_v18 }
 0x2b8   : > { %v1735_v26 = vpop.f32.mrf.mxu1 }
 0x2b9   : > { %1932 = vst.msk [vmem:[%s3067_s17 + $0x48] sm:$0xff] %vm389_vm0, %v1735_v26 }
 0x2c0   : > { %v1738_v49 = vpop.f32.mrf.mxu1 }
 0x2c1   : > { %1933 = vst.msk [vmem:[%s3067_s17 + $0x50] sm:$0xff] %vm389_vm0, %v1738_v49 }
 0x2c3   : > { %2189 = vmatmul.msk.bf16.gmra.mxu3 %vm1218_vm2, %v1855_v42 }
 0x2c8   : > { %v1740_v39 = vpop.f32.mrf.mxu1 }
 0x2c9   : > { %1934 = vst.msk [vmem:[%s3067_s17 + $0x58] sm:$0xff] %vm389_vm0, %v1740_v39 }
 0x2d0   : > { %v1743_v63 = vpop.f32.mrf.mxu1 }
 0x2d1   : > { %1935 = vst.msk [vmem:[%s3067_s17 + $0x60] sm:$0xff] %vm389_vm0, %v1743_v63 }
 0x2d3   : > { %2190 = vmatmul.msk.bf16.gmra.mxu3 %vm1218_vm2, %v1856_v32 }
 0x2d8   : > { %v1745_v48 = vpop.f32.mrf.mxu1 }
 0x2d9   : > { %1936 = vst.msk [vmem:[%s3067_s17 + $0x68] sm:$0xff] %vm389_vm0, %v1745_v48 }
 0x2e0   : > { %v1748_v6 = vpop.f32.mrf.mxu1 }
 0x2e1   : > { %1937 = vst.msk [vmem:[%s3067_s17 + $0x70] sm:$0xff] %vm389_vm0, %v1748_v6 }
 0x2e3   : > { %2191 = vmatmul.msk.bf16.gmra.mxu3 %vm1218_vm2, %v1857_v50 }
 0x2e8   : > { %v1750_v41 = vpop.f32.mrf.mxu1 }
 0x2e9   : > { %1938 = vst.msk [vmem:[%s3067_s17 + $0x78] sm:$0xff] %vm389_vm0, %v1750_v41 }
 0x2f6   : > { %v1818_v57 = vpop.f32.mrf.mxu2 }
 0x2f7   : > { %1939 = vst.msk [vmem:[%s3067_s17 + $0x80] sm:$0xff] %vm389_vm0, %v1818_v57 }
 0x2fe   : > { %v1820_v33 = vpop.f32.mrf.mxu2 }
 0x2ff   : > { %1940 = vst.msk [vmem:[%s3067_s17 + $0x88] sm:$0xff] %vm389_vm0, %v1820_v33 }
 0x306   : > { %v1823_v12 = vpop.f32.mrf.mxu2 }
 0x307   : > { %1941 = vst.msk [vmem:[%s3067_s17 + $0x90] sm:$0xff] %vm389_vm0, %v1823_v12 }
 0x30e   : > { %v1825_v55 = vpop.f32.mrf.mxu2 }
 0x30f   : > { %1942 = vst.msk [vmem:[%s3067_s17 + $0x98] sm:$0xff] %vm389_vm0, %v1825_v55 }
 0x316   : > { %v1828_v0 = vpop.f32.mrf.mxu2 }
 0x317   : > { %1943 = vst.msk [vmem:[%s3067_s17 + $0xa0] sm:$0xff] %vm389_vm0, %v1828_v0 }
 0x31e   : > { %v1830_v52 = vpop.f32.mrf.mxu2 }
 0x31f   : > { %1944 = vst.msk [vmem:[%s3067_s17 + $0xa8] sm:$0xff] %vm389_vm0, %v1830_v52 }
 0x326   : > { %v1833_v4 = vpop.f32.mrf.mxu2 }
 0x327   : > { %1945 = vst.msk [vmem:[%s3067_s17 + $0xb0] sm:$0xff] %vm389_vm0, %v1833_v4 }
 0x32e   : > { %v1835_v23 = vpop.f32.mrf.mxu2 }
 0x32f   : > { %1946 = vst.msk [vmem:[%s3067_s17 + $0xb8] sm:$0xff] %vm389_vm0, %v1835_v23 }
 0x336   : > { %v1903_v2 = vpop.f32.mrf.mxu3 }
 0x337   : > { %1947 = vst.msk [vmem:[%s3067_s17 + $0xc0] sm:$0xff] %vm389_vm0, %v1903_v2 }
 0x33e   : > { %v1905_v14 = vpop.f32.mrf.mxu3 }
 0x33f   : > { %1948 = vst.msk [vmem:[%s3067_s17 + $0xc8] sm:$0xff] %vm389_vm0, %v1905_v14 }
 0x346   : > { %v1908_v13 = vpop.f32.mrf.mxu3 }
 0x347   : > { %1949 = vst.msk [vmem:[%s3067_s17 + $0xd0] sm:$0xff] %vm389_vm0, %v1908_v13 }
 0x34e   : > { %v1910_v38 = vpop.f32.mrf.mxu3 }
 0x34f   : > { %1950 = vst.msk [vmem:[%s3067_s17 + $0xd8] sm:$0xff] %vm389_vm0, %v1910_v38 }
 0x356   : > { %v1913_v61 = vpop.f32.mrf.mxu3 }
 0x357   : > { %1951 = vst.msk [vmem:[%s3067_s17 + $0xe0] sm:$0xff] %vm389_vm0, %v1913_v61 }
 0x35e   : > { %v1915_v8 = vpop.f32.mrf.mxu3 }
 0x35f   : > { %1952 = vst.msk [vmem:[%s3067_s17 + $0xe8] sm:$0xff] %vm389_vm0, %v1915_v8 }
 0x366   : > { %v1918_v3 = vpop.f32.mrf.mxu3 }
 0x367   : > { %1953 = vst.msk [vmem:[%s3067_s17 + $0xf0] sm:$0xff] %vm389_vm0, %v1918_v3 }
 0x36e   : > { %v1920_v29 = vpop.f32.mrf.mxu3 }
 0x36f   : > { %1954 = vst.msk [vmem:[%s3067_s17 + $0xf8] sm:$0xff] %vm389_vm0, %v1920_v29 }
 0x370 PF: > { %s16_s21 = sadd.s32 1, %s2310_s21  }
 0x371   : > { %p13_p4 = scmp.ge.s32.totalorder %s16_s21, 6  }
 0x373   :  { %15 = sbr.rel (!%p13_p4) target bundleno = 1 (0x1), region = 74 }

</bundles_post_ra>
